<compile_context>
chip_gen: v7x
topology: tpu7x:2x2x1
jax: 0.10.0
libtpu: 0.0.40
codegen_flags: <defaults>
</compile_context>

<pallas_src>
import functools

import jax
import jax.numpy as jnp
from jax.experimental import pallas as pl
from jax.experimental.pallas import tpu as pltpu


# ---------------------------------------------------------------------------
# In-kernel helpers (f32 elementwise, bf16 MXU operands)
# ---------------------------------------------------------------------------

def _leaky(x, ns):
    return jnp.where(x >= 0, x, x * ns)


def _instance_norm(x, eps):
    # nn.InstanceNorm1d(affine=False): biased variance over the time axis.
    mean = jnp.mean(x, axis=0, keepdims=True)
    cen = x - mean
    var = jnp.mean(cen * cen, axis=0, keepdims=True)
    return cen * jax.lax.rsqrt(var + eps)


def _conv3_taps(xpad, w_ref, bias, T):
    """K=3 'valid' conv of a padded slab via tap-summed bf16 matmuls.
    xpad:(T+2,Cin) f32, w_ref: Ref (3,Cin,Cout) bf16, bias:(1,Cout) f32.
    Tap-sum is kept instead of an im2col lane-concat slab: at production widths
    (Cin = c_h = 512) each tap's contraction already fills the 256-wide MXU."""
    acc = jnp.dot(xpad[0:T, :].astype(jnp.bfloat16), w_ref[0],
                  preferred_element_type=jnp.float32)
    for k in (1, 2):
        acc = acc + jnp.dot(xpad[k:k + T, :].astype(jnp.bfloat16), w_ref[k],
                            preferred_element_type=jnp.float32)
    return acc + bias


# ---------------------------------------------------------------------------
# Kernels
# ---------------------------------------------------------------------------

def f0_conv_kernel(c_ref, w_ref, b_ref, out_ref, *, K, T):
    """Combined f0 conv: one zero-padded K=15 conv (the three original convs'
    weights are pre-summed, tap-aligned).  c:(1,T,c_a) w:(K,c_a,c_in) b:(1,c_in)."""
    ca = c_ref.shape[2]
    pad = (K - 1) // 2
    z = jnp.zeros((pad, ca), jnp.float32)
    xp = jnp.concatenate([z, c_ref[0], z], axis=0)            # (T+K-1, c_a)
    acc = jnp.zeros(out_ref.shape[1:], jnp.float32)
    for k in range(K):
        acc = acc + jnp.dot(xp[k:k + T, :].astype(jnp.bfloat16), w_ref[k],
                            preferred_element_type=jnp.float32)
    out_ref[0] = acc + b_ref[...]


def conv_block_kernel(x_ref, c_ref, w1_ref, b1_ref, w2_ref, b2_ref, out_ref,
                      *, ns, eps):
    """Fused conv_block: (x+c) -> reflect-conv3 -> leaky -> (+c) -> reflect-conv3
    -> leaky -> InstanceNorm1d -> + x.   x/c:(1,T,C), wX:(3,C,C) bf16, bX:(1,C)."""
    x = x_ref[0]                                              # (T, C) f32
    cc = c_ref[0]
    T = x.shape[0]

    def rconv(t, w_ref, b_ref):
        # reflect pad (1,1) along time: matches F.pad(mode='reflect') for k=3.
        xp = jnp.concatenate([t[1:2, :], t, t[T - 2:T - 1, :]], axis=0)
        return _leaky(_conv3_taps(xp, w_ref, b_ref[...], T), ns)

    h = rconv(x + cc, w1_ref, b1_ref)
    h = rconv(h + cc, w2_ref, b2_ref)
    out_ref[0] = _instance_norm(h, eps) + x


def dense_block_kernel(x_ref, c_ref, w1_ref, b1_ref, w2_ref, b2_ref, out_ref,
                       *, ns, eps):
    """Fused dense_block: (x+c) -> linear -> leaky -> (+c) -> linear -> leaky
    -> InstanceNorm1d -> + x."""
    x = x_ref[0]
    cc = c_ref[0]

    def dense(t, w_ref, b_ref):
        y = jnp.dot(t.astype(jnp.bfloat16), w_ref[...],
                    preferred_element_type=jnp.float32) + b_ref[...]
        return _leaky(y, ns)

    h = dense(x + cc, w1_ref, b1_ref)
    h = dense(h + cc, w2_ref, b2_ref)
    out_ref[0] = _instance_norm(h, eps) + x


def bilstm_kernel(x_ref, c_ref, wih_ref, whh_ref, b_ref, y_ref, h_sc, c_sc, *, H):
    """One recurrence step of one LSTM direction.  Grid = (direction, seq-pos).
    The 'sequence' is the batch axis B, the LSTM batch is the time axis T
    (reproducing the torch permute into a batch_first=False nn.LSTM).  The `+ c`
    and the x @ W_ih^T projection are fused here; the backward direction's
    reversal is handled by the BlockSpec index_maps."""
    s = pl.program_id(1)

    @pl.when(s == 0)
    def _():
        h_sc[...] = jnp.zeros_like(h_sc)
        c_sc[...] = jnp.zeros_like(c_sc)

    x = x_ref[0] + c_ref[0]                                   # (T, c_h) f32
    gates = (jnp.dot(x.astype(jnp.bfloat16), wih_ref[0],
                     preferred_element_type=jnp.float32)
             + jnp.dot(h_sc[...].astype(jnp.bfloat16), whh_ref[0],
                       preferred_element_type=jnp.float32)
             + b_ref[0])                                      # (T, 4H) f32
    # TODO(synk): pad each gate block to a 128-lane multiple so the slices below
    # avoid sub-lane-width extraction on the recurrent critical path.
    i = jax.nn.sigmoid(gates[:, 0 * H:1 * H])
    f = jax.nn.sigmoid(gates[:, 1 * H:2 * H])
    g = jnp.tanh(gates[:, 2 * H:3 * H])
    o = jax.nn.sigmoid(gates[:, 3 * H:4 * H])
    c_new = f * c_sc[...] + i * g
    h_new = o * jnp.tanh(c_new)
    c_sc[...] = c_new
    h_sc[...] = h_new
    y_ref[0, 0] = h_new


def head_kernel(o_ref, y_ref, w5a_ref, w5b_ref, w5c_ref, b5_ref, wl_ref, bl_ref,
                out_ref, *, ns):
    """cat([out, rnn_fwd, rnn_bwd]) @ dense5 -> leaky -> final linear, emitted
    directly in NCT layout (lane-dense along T; the output transpose is fused)."""
    o = o_ref[0]                                              # (T, c_h)
    yf = y_ref[0, 0]                                          # (T, H) forward
    yb = y_ref[1, 0]                                          # (T, H) backward
    # dense5 on the concatenation, expressed as a split matmul (no lane concat).
    h = (jnp.dot(o.astype(jnp.bfloat16), w5a_ref[...],
                 preferred_element_type=jnp.float32)
         + jnp.dot(yf.astype(jnp.bfloat16), w5b_ref[...],
                   preferred_element_type=jnp.float32)
         + jnp.dot(yb.astype(jnp.bfloat16), w5c_ref[...],
                   preferred_element_type=jnp.float32)
         + b5_ref[...])
    h = _leaky(h, ns)
    # Final linear computed as W @ h^T (rhs-transposed matmul) so the result is
    # already (c_out, T); wl is kept in the native torch (c_out, c_h) layout.
    yT = jax.lax.dot_general(wl_ref[...], h.astype(jnp.bfloat16),
                             dimension_numbers=(((1,), (1,)), ((), ())),
                             preferred_element_type=jnp.float32)
    out_ref[0] = yT + bl_ref[...]


# ---------------------------------------------------------------------------
# pallas_call wrappers
# ---------------------------------------------------------------------------
# TODO(synk): at production sequence lengths, tile the time axis (with a two-pass
# or Welford instance-norm) so the per-batch blocks respect v7x's 64 MiB VMEM.

def pallas_f0_conv(cf, wc, bc):
    B, T, ca = cf.shape
    K, _, Cout = wc.shape
    kernel = functools.partial(f0_conv_kernel, K=K, T=T)
    return pl.pallas_call(
        kernel,
        out_shape=jax.ShapeDtypeStruct((B, T, Cout), jnp.float32),
        grid_spec=pltpu.PrefetchScalarGridSpec(
            num_scalar_prefetch=0, grid=(B,),
            in_specs=[pl.BlockSpec((1, T, ca), lambda b: (b, 0, 0)),
                      pl.BlockSpec((K, ca, Cout), lambda b: (0, 0, 0)),
                      pl.BlockSpec((1, Cout), lambda b: (0, 0))],
            out_specs=pl.BlockSpec((1, T, Cout), lambda b: (b, 0, 0))),
        compiler_params=pltpu.CompilerParams(dimension_semantics=("parallel",)),
    )(cf, wc, bc)


def pallas_conv_block(x, c, w1, b1, w2, b2, *, ns, eps=1e-5):
    B, T, Cin = x.shape
    Ch = w1.shape[2]
    kernel = functools.partial(conv_block_kernel, ns=ns, eps=eps)
    return pl.pallas_call(
        kernel,
        out_shape=jax.ShapeDtypeStruct((B, T, Ch), jnp.float32),
        grid_spec=pltpu.PrefetchScalarGridSpec(
            num_scalar_prefetch=0, grid=(B,),
            in_specs=[pl.BlockSpec((1, T, Cin), lambda b: (b, 0, 0)),
                      pl.BlockSpec((1, T, c.shape[2]), lambda b: (b, 0, 0)),
                      pl.BlockSpec(w1.shape, lambda b: (0, 0, 0)),
                      pl.BlockSpec((1, Ch), lambda b: (0, 0)),
                      pl.BlockSpec(w2.shape, lambda b: (0, 0, 0)),
                      pl.BlockSpec((1, Ch), lambda b: (0, 0))],
            out_specs=pl.BlockSpec((1, T, Ch), lambda b: (b, 0, 0))),
        compiler_params=pltpu.CompilerParams(dimension_semantics=("parallel",)),
    )(x, c, w1, b1, w2, b2)


def pallas_dense_block(x, c, w1, b1, w2, b2, *, ns, eps=1e-5):
    B, T, Ch = x.shape
    kernel = functools.partial(dense_block_kernel, ns=ns, eps=eps)
    return pl.pallas_call(
        kernel,
        out_shape=jax.ShapeDtypeStruct((B, T, Ch), jnp.float32),
        grid_spec=pltpu.PrefetchScalarGridSpec(
            num_scalar_prefetch=0, grid=(B,),
            in_specs=[pl.BlockSpec((1, T, Ch), lambda b: (b, 0, 0)),
                      pl.BlockSpec((1, T, c.shape[2]), lambda b: (b, 0, 0)),
                      pl.BlockSpec(w1.shape, lambda b: (0, 0)),
                      pl.BlockSpec((1, Ch), lambda b: (0, 0)),
                      pl.BlockSpec(w2.shape, lambda b: (0, 0)),
                      pl.BlockSpec((1, Ch), lambda b: (0, 0))],
            out_specs=pl.BlockSpec((1, T, Ch), lambda b: (b, 0, 0))),
        compiler_params=pltpu.CompilerParams(dimension_semantics=("parallel",)),
    )(x, c, w1, b1, w2, b2)


def pallas_bilstm(out, c, wih, whh, b):
    """Both LSTM directions in one call.  Grid (direction=2, seq=B); the backward
    direction reads/writes blocks in reverse order via the index_maps."""
    B, T, Ch = out.shape
    H = whh.shape[1]
    kernel = functools.partial(bilstm_kernel, H=H)

    def seq_idx(d, s):
        # d=0 (forward): s ; d=1 (backward): B-1-s
        return s + d * (B - 1 - 2 * s)

    return pl.pallas_call(
        kernel,
        out_shape=jax.ShapeDtypeStruct((2, B, T, H), jnp.float32),
        grid_spec=pltpu.PrefetchScalarGridSpec(
            num_scalar_prefetch=0, grid=(2, B),
            in_specs=[pl.BlockSpec((1, T, Ch), lambda d, s: (seq_idx(d, s), 0, 0)),
                      pl.BlockSpec((1, T, c.shape[2]),
                                   lambda d, s: (seq_idx(d, s), 0, 0)),
                      pl.BlockSpec((1, Ch, 4 * H), lambda d, s: (d, 0, 0)),
                      pl.BlockSpec((1, H, 4 * H), lambda d, s: (d, 0, 0)),
                      pl.BlockSpec((1, 1, 4 * H), lambda d, s: (d, 0, 0))],
            out_specs=pl.BlockSpec((1, 1, T, H),
                                   lambda d, s: (d, seq_idx(d, s), 0, 0)),
            scratch_shapes=[pltpu.VMEM((T, H), jnp.float32),
                            pltpu.VMEM((T, H), jnp.float32)]),
        compiler_params=pltpu.CompilerParams(
            dimension_semantics=("parallel", "arbitrary")),
    )(out, c, wih, whh, b)


def pallas_head(out, y, w5a, w5b, w5c, b5, wl, bl, *, ns):
    B, T, Ch = out.shape
    H = y.shape[3]
    Cout = wl.shape[0]
    kernel = functools.partial(head_kernel, ns=ns)
    return pl.pallas_call(
        kernel,
        out_shape=jax.ShapeDtypeStruct((B, Cout, T), jnp.float32),
        grid_spec=pltpu.PrefetchScalarGridSpec(
            num_scalar_prefetch=0, grid=(B,),
            in_specs=[pl.BlockSpec((1, T, Ch), lambda b: (b, 0, 0)),
                      pl.BlockSpec((2, 1, T, H), lambda b: (0, b, 0, 0)),
                      pl.BlockSpec(w5a.shape, lambda b: (0, 0)),
                      pl.BlockSpec(w5b.shape, lambda b: (0, 0)),
                      pl.BlockSpec(w5c.shape, lambda b: (0, 0)),
                      pl.BlockSpec((1, Ch), lambda b: (0, 0)),
                      pl.BlockSpec(wl.shape, lambda b: (0, 0)),
                      pl.BlockSpec(bl.shape, lambda b: (0, 0))],
            out_specs=pl.BlockSpec((1, Cout, T), lambda b: (b, 0, 0))),
        compiler_params=pltpu.CompilerParams(dimension_semantics=("parallel",)),
    )(out, y, w5a, w5b, w5c, b5, wl, bl)


# ---------------------------------------------------------------------------
# Decoder forward (channels-last internally, NCT at the boundaries)
# ---------------------------------------------------------------------------

def decoder_forward(params, x_nct, c_nct, ns=0.2):
    # NCT -> (B, T, C): the channel / contraction axis lands on TPU lanes.
    x = jnp.transpose(x_nct, (0, 2, 1))
    cf = jnp.transpose(c_nct, (0, 2, 1))

    # The three centred zero-padded f0 convs (k=5/11/15) are one k=15 conv with
    # tap-aligned summed weights (tiny one-off weight prep, exact in f32).
    wc = (params['f0c3_w']
          + jnp.pad(params['f0c2_w'], ((2, 2), (0, 0), (0, 0)))
          + jnp.pad(params['f0c1_w'], ((5, 5), (0, 0), (0, 0))))
    bc = params['f0c1_b'] + params['f0c2_b'] + params['f0c3_b']
    c = pallas_f0_conv(cf, wc.astype(jnp.bfloat16), bc)        # (B, T, c_in)

    out = pallas_conv_block(x, c, params['conv1_w'], params['conv1_b'],
                            params['conv2_w'], params['conv2_b'], ns=ns)
    out = pallas_conv_block(out, c, params['conv3_w'], params['conv3_b'],
                            params['conv4_w'], params['conv4_b'], ns=ns)
    out = pallas_conv_block(out, c, params['conv5_w'], params['conv5_b'],
                            params['conv6_w'], params['conv6_b'], ns=ns)

    out = pallas_dense_block(out, c, params['dense1_w'], params['dense1_b'],
                             params['dense2_w'], params['dense2_b'], ns=ns)
    out = pallas_dense_block(out, c, params['dense3_w'], params['dense3_b'],
                             params['dense4_w'], params['dense4_b'], ns=ns)

    # Bidirectional LSTM (fwd + bwd fused, reversal folded into BlockSpecs).
    y = pallas_bilstm(out, c, params['lstm_wih'], params['lstm_whh'],
                      params['lstm_b'])                        # (2, B, T, H)

    # dense5 + leaky + final linear, written directly as NCT (B, c_out, T).
    return pallas_head(out, y, params['d5_wa'], params['d5_wb'], params['d5_wc'],
                       params['d5_b'], params['lin_w'], params['lin_b'], ns=ns)


# ---------------------------------------------------------------------------
# Deterministic synthetic parameters (shapes follow Decoder.__init__)
# ---------------------------------------------------------------------------

def init_params(key, c_in, c_out, c_h, c_a):
    keys = iter(jax.random.split(key, 64))

    def nrm(shape, dtype=jnp.float32, scale=0.08):
        return (scale * jax.random.normal(next(keys), shape, jnp.float32)).astype(dtype)

    bf = jnp.bfloat16
    H = c_h // 2
    p = {}
    # f0 conv weights kept f32 so they can be tap-aligned & summed exactly.
    p['f0c1_w'] = nrm((5, c_a, c_in));   p['f0c1_b'] = nrm((1, c_in))
    p['f0c2_w'] = nrm((11, c_a, c_in));  p['f0c2_b'] = nrm((1, c_in))
    p['f0c3_w'] = nrm((15, c_a, c_in));  p['f0c3_b'] = nrm((1, c_in))
    # conv / dense weights stored pre-transposed (Cin, Cout) and in bf16; biases f32.
    p['conv1_w'] = nrm((3, c_in, c_h), bf); p['conv1_b'] = nrm((1, c_h))
    for i in range(2, 7):
        p[f'conv{i}_w'] = nrm((3, c_h, c_h), bf)
        p[f'conv{i}_b'] = nrm((1, c_h))
    for i in range(1, 5):
        p[f'dense{i}_w'] = nrm((c_h, c_h), bf)
        p[f'dense{i}_b'] = nrm((1, c_h))
    # LSTM: directions stacked on the leading axis; b = b_ih + b_hh folded.
    p['lstm_wih'] = nrm((2, c_h, 4 * H), bf)   # W_ih^T per direction
    p['lstm_whh'] = nrm((2, H, 4 * H), bf)     # W_hh^T per direction
    p['lstm_b'] = nrm((2, 1, 4 * H))
    # dense5 split along its input so cat([out, fwd, bwd]) needs no lane concat.
    p['d5_wa'] = nrm((c_h, c_h), bf)
    p['d5_wb'] = nrm((H, c_h), bf)
    p['d5_wc'] = nrm((H, c_h), bf)
    p['d5_b'] = nrm((1, c_h))
    # Final linear kept in the native torch (c_out, c_h) layout so the head can
    # emit (c_out, T) directly; bias stored as a column vector.
    p['lin_w'] = nrm((c_out, c_h), bf)
    p['lin_b'] = nrm((c_out, 1))
    return p


if __name__ == "__main__":
    # Scaled-down Decoder(c_in=64, c_out=16, c_h=64, c_a=16).  The module's forward
    # requires c_in == c_h (residuals / conditioning broadcast), as in the default
    # Decoder(512, 80, 512, 80).
    c_in, c_out, c_h, c_a = 64, 16, 64, 16
    B, T = 2, 16

    key = jax.random.PRNGKey(0)
    kx, kc, kp = jax.random.split(key, 3)
    x = jax.random.normal(kx, (B, c_in, T), dtype=jnp.float32)    # NCT (torch layout)
    cond = jax.random.normal(kc, (B, c_a, T), dtype=jnp.float32)  # NCT
    params = init_params(kp, c_in, c_out, c_h, c_a)

    fwd = jax.jit(functools.partial(decoder_forward, ns=0.2))
    out = fwd(params, x, cond)
    jax.block_until_ready(out)
    assert out.shape == (B, c_out, T), out.shape
    assert jnp.all(jnp.isfinite(out))
    print("KERNEL_OK")
</pallas_src>

<mosaic_0001>
module attributes {stable_mosaic.version = 11 : i64} {
  func.func @f0_conv_kernel(%arg0: i32, %arg1: memref<1x16x16xf32, #tpu.memory_space<vmem>>, %arg2: memref<15x16x64xbf16, #tpu.memory_space<vmem>>, %arg3: memref<1x64xf32, #tpu.memory_space<vmem>>, %arg4: memref<1x16x64xf32, #tpu.memory_space<vmem>>) attributes {dimension_semantics = [#tpu.dimension_semantics<parallel>], iteration_bounds = array<i64: 2>, scalar_prefetch = 0 : i64, scratch_operands = 0 : i64, tpu.core_type = #tpu.core_type<tc>, window_params = [{transform_indices = @transform_0, window_bounds = array<i64: 1, 16, 16>}, {pipeline_mode = #tpu.pipeline_mode<synchronous>, transform_indices = @transform_1, window_bounds = array<i64: 15, 16, 64>}, {pipeline_mode = #tpu.pipeline_mode<synchronous>, transform_indices = @transform_2, window_bounds = array<i64: 1, 64>}, {transform_indices = @transform_3, window_bounds = array<i64: 1, 16, 64>}]} {
    %cst = arith.constant 0.000000e+00 : f32
    %0 = vector.broadcast %cst : f32 to vector<7x16xf32>
    %c0 = arith.constant 0 : index
    %c0_0 = arith.constant 0 : index
    %c0_1 = arith.constant 0 : index
    %1 = vector.load %arg1[%c0, %c0_0, %c0_1] : memref<1x16x16xf32, #tpu.memory_space<vmem>>, vector<1x16x16xf32>
    %2 = vector.shape_cast %1 : vector<1x16x16xf32> to vector<16x16xf32>
    %3 = tpu.concatenate %0, %2, %0 in 0 : vector<7x16xf32>, vector<16x16xf32>, vector<7x16xf32> -> vector<30x16xf32>
    %cst_2 = arith.constant 0.000000e+00 : f32
    %4 = vector.broadcast %cst_2 : f32 to vector<16x64xf32>
    %5 = vector.extract_strided_slice %3 {offsets = [0, 0], sizes = [16, 16], strides = [1, 1]} : vector<30x16xf32> to vector<16x16xf32>
    %6 = arith.truncf %5 : vector<16x16xf32> to vector<16x16xbf16>
    %c0_3 = arith.constant 0 : index
    %c0_4 = arith.constant 0 : index
    %c0_5 = arith.constant 0 : index
    %7 = vector.load %arg2[%c0_3, %c0_4, %c0_5] : memref<15x16x64xbf16, #tpu.memory_space<vmem>>, vector<1x16x64xbf16>
    %8 = vector.shape_cast %7 : vector<1x16x64xbf16> to vector<16x64xbf16>
    %cst_6 = arith.constant dense<0.000000e+00> : vector<16x64xf32>
    %9 = tpu.matmul %6, %8, %cst_6 {dimension_numbers = #tpu.dot_dimension_numbers<[1], [0], [0], [1], [0, 0, 1, 1], [], []>} : vector<16x16xbf16>, vector<16x64xbf16>, vector<16x64xf32> -> vector<16x64xf32>
    %10 = arith.addf %4, %9 : vector<16x64xf32>
    %11 = vector.extract_strided_slice %3 {offsets = [1, 0], sizes = [16, 16], strides = [1, 1]} : vector<30x16xf32> to vector<16x16xf32>
    %12 = arith.truncf %11 : vector<16x16xf32> to vector<16x16xbf16>
    %c1 = arith.constant 1 : index
    %c0_7 = arith.constant 0 : index
    %c0_8 = arith.constant 0 : index
    %13 = vector.load %arg2[%c1, %c0_7, %c0_8] : memref<15x16x64xbf16, #tpu.memory_space<vmem>>, vector<1x16x64xbf16>
    %14 = vector.shape_cast %13 : vector<1x16x64xbf16> to vector<16x64xbf16>
    %cst_9 = arith.constant dense<0.000000e+00> : vector<16x64xf32>
    %15 = tpu.matmul %12, %14, %cst_9 {dimension_numbers = #tpu.dot_dimension_numbers<[1], [0], [0], [1], [0, 0, 1, 1], [], []>} : vector<16x16xbf16>, vector<16x64xbf16>, vector<16x64xf32> -> vector<16x64xf32>
    %16 = arith.addf %10, %15 : vector<16x64xf32>
    %17 = vector.extract_strided_slice %3 {offsets = [2, 0], sizes = [16, 16], strides = [1, 1]} : vector<30x16xf32> to vector<16x16xf32>
    %18 = arith.truncf %17 : vector<16x16xf32> to vector<16x16xbf16>
    %c2 = arith.constant 2 : index
    %c0_10 = arith.constant 0 : index
    %c0_11 = arith.constant 0 : index
    %19 = vector.load %arg2[%c2, %c0_10, %c0_11] : memref<15x16x64xbf16, #tpu.memory_space<vmem>>, vector<1x16x64xbf16>
    %20 = vector.shape_cast %19 : vector<1x16x64xbf16> to vector<16x64xbf16>
    %cst_12 = arith.constant dense<0.000000e+00> : vector<16x64xf32>
    %21 = tpu.matmul %18, %20, %cst_12 {dimension_numbers = #tpu.dot_dimension_numbers<[1], [0], [0], [1], [0, 0, 1, 1], [], []>} : vector<16x16xbf16>, vector<16x64xbf16>, vector<16x64xf32> -> vector<16x64xf32>
    %22 = arith.addf %16, %21 : vector<16x64xf32>
    %23 = vector.extract_strided_slice %3 {offsets = [3, 0], sizes = [16, 16], strides = [1, 1]} : vector<30x16xf32> to vector<16x16xf32>
    %24 = arith.truncf %23 : vector<16x16xf32> to vector<16x16xbf16>
    %c3 = arith.constant 3 : index
    %c0_13 = arith.constant 0 : index
    %c0_14 = arith.constant 0 : index
    %25 = vector.load %arg2[%c3, %c0_13, %c0_14] : memref<15x16x64xbf16, #tpu.memory_space<vmem>>, vector<1x16x64xbf16>
    %26 = vector.shape_cast %25 : vector<1x16x64xbf16> to vector<16x64xbf16>
    %cst_15 = arith.constant dense<0.000000e+00> : vector<16x64xf32>
    %27 = tpu.matmul %24, %26, %cst_15 {dimension_numbers = #tpu.dot_dimension_numbers<[1], [0], [0], [1], [0, 0, 1, 1], [], []>} : vector<16x16xbf16>, vector<16x64xbf16>, vector<16x64xf32> -> vector<16x64xf32>
    %28 = arith.addf %22, %27 : vector<16x64xf32>
    %29 = vector.extract_strided_slice %3 {offsets = [4, 0], sizes = [16, 16], strides = [1, 1]} : vector<30x16xf32> to vector<16x16xf32>
    %30 = arith.truncf %29 : vector<16x16xf32> to vector<16x16xbf16>
    %c4 = arith.constant 4 : index
    %c0_16 = arith.constant 0 : index
    %c0_17 = arith.constant 0 : index
    %31 = vector.load %arg2[%c4, %c0_16, %c0_17] : memref<15x16x64xbf16, #tpu.memory_space<vmem>>, vector<1x16x64xbf16>
    %32 = vector.shape_cast %31 : vector<1x16x64xbf16> to vector<16x64xbf16>
    %cst_18 = arith.constant dense<0.000000e+00> : vector<16x64xf32>
    %33 = tpu.matmul %30, %32, %cst_18 {dimension_numbers = #tpu.dot_dimension_numbers<[1], [0], [0], [1], [0, 0, 1, 1], [], []>} : vector<16x16xbf16>, vector<16x64xbf16>, vector<16x64xf32> -> vector<16x64xf32>
    %34 = arith.addf %28, %33 : vector<16x64xf32>
    %35 = vector.extract_strided_slice %3 {offsets = [5, 0], sizes = [16, 16], strides = [1, 1]} : vector<30x16xf32> to vector<16x16xf32>
    %36 = arith.truncf %35 : vector<16x16xf32> to vector<16x16xbf16>
    %c5 = arith.constant 5 : index
    %c0_19 = arith.constant 0 : index
    %c0_20 = arith.constant 0 : index
    %37 = vector.load %arg2[%c5, %c0_19, %c0_20] : memref<15x16x64xbf16, #tpu.memory_space<vmem>>, vector<1x16x64xbf16>
    %38 = vector.shape_cast %37 : vector<1x16x64xbf16> to vector<16x64xbf16>
    %cst_21 = arith.constant dense<0.000000e+00> : vector<16x64xf32>
    %39 = tpu.matmul %36, %38, %cst_21 {dimension_numbers = #tpu.dot_dimension_numbers<[1], [0], [0], [1], [0, 0, 1, 1], [], []>} : vector<16x16xbf16>, vector<16x64xbf16>, vector<16x64xf32> -> vector<16x64xf32>
    %40 = arith.addf %34, %39 : vector<16x64xf32>
    %41 = vector.extract_strided_slice %3 {offsets = [6, 0], sizes = [16, 16], strides = [1, 1]} : vector<30x16xf32> to vector<16x16xf32>
    %42 = arith.truncf %41 : vector<16x16xf32> to vector<16x16xbf16>
    %c6 = arith.constant 6 : index
    %c0_22 = arith.constant 0 : index
    %c0_23 = arith.constant 0 : index
    %43 = vector.load %arg2[%c6, %c0_22, %c0_23] : memref<15x16x64xbf16, #tpu.memory_space<vmem>>, vector<1x16x64xbf16>
    %44 = vector.shape_cast %43 : vector<1x16x64xbf16> to vector<16x64xbf16>
    %cst_24 = arith.constant dense<0.000000e+00> : vector<16x64xf32>
    %45 = tpu.matmul %42, %44, %cst_24 {dimension_numbers = #tpu.dot_dimension_numbers<[1], [0], [0], [1], [0, 0, 1, 1], [], []>} : vector<16x16xbf16>, vector<16x64xbf16>, vector<16x64xf32> -> vector<16x64xf32>
    %46 = arith.addf %40, %45 : vector<16x64xf32>
    %47 = vector.extract_strided_slice %3 {offsets = [7, 0], sizes = [16, 16], strides = [1, 1]} : vector<30x16xf32> to vector<16x16xf32>
    %48 = arith.truncf %47 : vector<16x16xf32> to vector<16x16xbf16>
    %c7 = arith.constant 7 : index
    %c0_25 = arith.constant 0 : index
    %c0_26 = arith.constant 0 : index
    %49 = vector.load %arg2[%c7, %c0_25, %c0_26] : memref<15x16x64xbf16, #tpu.memory_space<vmem>>, vector<1x16x64xbf16>
    %50 = vector.shape_cast %49 : vector<1x16x64xbf16> to vector<16x64xbf16>
    %cst_27 = arith.constant dense<0.000000e+00> : vector<16x64xf32>
    %51 = tpu.matmul %48, %50, %cst_27 {dimension_numbers = #tpu.dot_dimension_numbers<[1], [0], [0], [1], [0, 0, 1, 1], [], []>} : vector<16x16xbf16>, vector<16x64xbf16>, vector<16x64xf32> -> vector<16x64xf32>
    %52 = arith.addf %46, %51 : vector<16x64xf32>
    %53 = vector.extract_strided_slice %3 {offsets = [8, 0], sizes = [16, 16], strides = [1, 1]} : vector<30x16xf32> to vector<16x16xf32>
    %54 = arith.truncf %53 : vector<16x16xf32> to vector<16x16xbf16>
    %c8 = arith.constant 8 : index
    %c0_28 = arith.constant 0 : index
    %c0_29 = arith.constant 0 : index
    %55 = vector.load %arg2[%c8, %c0_28, %c0_29] : memref<15x16x64xbf16, #tpu.memory_space<vmem>>, vector<1x16x64xbf16>
    %56 = vector.shape_cast %55 : vector<1x16x64xbf16> to vector<16x64xbf16>
    %cst_30 = arith.constant dense<0.000000e+00> : vector<16x64xf32>
    %57 = tpu.matmul %54, %56, %cst_30 {dimension_numbers = #tpu.dot_dimension_numbers<[1], [0], [0], [1], [0, 0, 1, 1], [], []>} : vector<16x16xbf16>, vector<16x64xbf16>, vector<16x64xf32> -> vector<16x64xf32>
    %58 = arith.addf %52, %57 : vector<16x64xf32>
    %59 = vector.extract_strided_slice %3 {offsets = [9, 0], sizes = [16, 16], strides = [1, 1]} : vector<30x16xf32> to vector<16x16xf32>
    %60 = arith.truncf %59 : vector<16x16xf32> to vector<16x16xbf16>
    %c9 = arith.constant 9 : index
    %c0_31 = arith.constant 0 : index
    %c0_32 = arith.constant 0 : index
    %61 = vector.load %arg2[%c9, %c0_31, %c0_32] : memref<15x16x64xbf16, #tpu.memory_space<vmem>>, vector<1x16x64xbf16>
    %62 = vector.shape_cast %61 : vector<1x16x64xbf16> to vector<16x64xbf16>
    %cst_33 = arith.constant dense<0.000000e+00> : vector<16x64xf32>
    %63 = tpu.matmul %60, %62, %cst_33 {dimension_numbers = #tpu.dot_dimension_numbers<[1], [0], [0], [1], [0, 0, 1, 1], [], []>} : vector<16x16xbf16>, vector<16x64xbf16>, vector<16x64xf32> -> vector<16x64xf32>
    %64 = arith.addf %58, %63 : vector<16x64xf32>
    %65 = vector.extract_strided_slice %3 {offsets = [10, 0], sizes = [16, 16], strides = [1, 1]} : vector<30x16xf32> to vector<16x16xf32>
    %66 = arith.truncf %65 : vector<16x16xf32> to vector<16x16xbf16>
    %c10 = arith.constant 10 : index
    %c0_34 = arith.constant 0 : index
    %c0_35 = arith.constant 0 : index
    %67 = vector.load %arg2[%c10, %c0_34, %c0_35] : memref<15x16x64xbf16, #tpu.memory_space<vmem>>, vector<1x16x64xbf16>
    %68 = vector.shape_cast %67 : vector<1x16x64xbf16> to vector<16x64xbf16>
    %cst_36 = arith.constant dense<0.000000e+00> : vector<16x64xf32>
    %69 = tpu.matmul %66, %68, %cst_36 {dimension_numbers = #tpu.dot_dimension_numbers<[1], [0], [0], [1], [0, 0, 1, 1], [], []>} : vector<16x16xbf16>, vector<16x64xbf16>, vector<16x64xf32> -> vector<16x64xf32>
    %70 = arith.addf %64, %69 : vector<16x64xf32>
    %71 = vector.extract_strided_slice %3 {offsets = [11, 0], sizes = [16, 16], strides = [1, 1]} : vector<30x16xf32> to vector<16x16xf32>
    %72 = arith.truncf %71 : vector<16x16xf32> to vector<16x16xbf16>
    %c11 = arith.constant 11 : index
    %c0_37 = arith.constant 0 : index
    %c0_38 = arith.constant 0 : index
    %73 = vector.load %arg2[%c11, %c0_37, %c0_38] : memref<15x16x64xbf16, #tpu.memory_space<vmem>>, vector<1x16x64xbf16>
    %74 = vector.shape_cast %73 : vector<1x16x64xbf16> to vector<16x64xbf16>
    %cst_39 = arith.constant dense<0.000000e+00> : vector<16x64xf32>
    %75 = tpu.matmul %72, %74, %cst_39 {dimension_numbers = #tpu.dot_dimension_numbers<[1], [0], [0], [1], [0, 0, 1, 1], [], []>} : vector<16x16xbf16>, vector<16x64xbf16>, vector<16x64xf32> -> vector<16x64xf32>
    %76 = arith.addf %70, %75 : vector<16x64xf32>
    %77 = vector.extract_strided_slice %3 {offsets = [12, 0], sizes = [16, 16], strides = [1, 1]} : vector<30x16xf32> to vector<16x16xf32>
    %78 = arith.truncf %77 : vector<16x16xf32> to vector<16x16xbf16>
    %c12 = arith.constant 12 : index
    %c0_40 = arith.constant 0 : index
    %c0_41 = arith.constant 0 : index
    %79 = vector.load %arg2[%c12, %c0_40, %c0_41] : memref<15x16x64xbf16, #tpu.memory_space<vmem>>, vector<1x16x64xbf16>
    %80 = vector.shape_cast %79 : vector<1x16x64xbf16> to vector<16x64xbf16>
    %cst_42 = arith.constant dense<0.000000e+00> : vector<16x64xf32>
    %81 = tpu.matmul %78, %80, %cst_42 {dimension_numbers = #tpu.dot_dimension_numbers<[1], [0], [0], [1], [0, 0, 1, 1], [], []>} : vector<16x16xbf16>, vector<16x64xbf16>, vector<16x64xf32> -> vector<16x64xf32>
    %82 = arith.addf %76, %81 : vector<16x64xf32>
    %83 = vector.extract_strided_slice %3 {offsets = [13, 0], sizes = [16, 16], strides = [1, 1]} : vector<30x16xf32> to vector<16x16xf32>
    %84 = arith.truncf %83 : vector<16x16xf32> to vector<16x16xbf16>
    %c13 = arith.constant 13 : index
    %c0_43 = arith.constant 0 : index
    %c0_44 = arith.constant 0 : index
    %85 = vector.load %arg2[%c13, %c0_43, %c0_44] : memref<15x16x64xbf16, #tpu.memory_space<vmem>>, vector<1x16x64xbf16>
    %86 = vector.shape_cast %85 : vector<1x16x64xbf16> to vector<16x64xbf16>
    %cst_45 = arith.constant dense<0.000000e+00> : vector<16x64xf32>
    %87 = tpu.matmul %84, %86, %cst_45 {dimension_numbers = #tpu.dot_dimension_numbers<[1], [0], [0], [1], [0, 0, 1, 1], [], []>} : vector<16x16xbf16>, vector<16x64xbf16>, vector<16x64xf32> -> vector<16x64xf32>
    %88 = arith.addf %82, %87 : vector<16x64xf32>
    %89 = vector.extract_strided_slice %3 {offsets = [14, 0], sizes = [16, 16], strides = [1, 1]} : vector<30x16xf32> to vector<16x16xf32>
    %90 = arith.truncf %89 : vector<16x16xf32> to vector<16x16xbf16>
    %c14 = arith.constant 14 : index
    %c0_46 = arith.constant 0 : index
    %c0_47 = arith.constant 0 : index
    %91 = vector.load %arg2[%c14, %c0_46, %c0_47] : memref<15x16x64xbf16, #tpu.memory_space<vmem>>, vector<1x16x64xbf16>
    %92 = vector.shape_cast %91 : vector<1x16x64xbf16> to vector<16x64xbf16>
    %cst_48 = arith.constant dense<0.000000e+00> : vector<16x64xf32>
    %93 = tpu.matmul %90, %92, %cst_48 {dimension_numbers = #tpu.dot_dimension_numbers<[1], [0], [0], [1], [0, 0, 1, 1], [], []>} : vector<16x16xbf16>, vector<16x64xbf16>, vector<16x64xf32> -> vector<16x64xf32>
    %94 = arith.addf %88, %93 : vector<16x64xf32>
    %c0_49 = arith.constant 0 : index
    %c0_50 = arith.constant 0 : index
    %95 = vector.load %arg3[%c0_49, %c0_50] : memref<1x64xf32, #tpu.memory_space<vmem>>, vector<1x64xf32>
    %96 = vector.broadcast %95 : vector<1x64xf32> to vector<16x64xf32>
    %97 = arith.addf %94, %96 : vector<16x64xf32>
    %c0_51 = arith.constant 0 : index
    %c0_52 = arith.constant 0 : index
    %c0_53 = arith.constant 0 : index
    %98 = vector.load %arg4[%c0_51, %c0_52, %c0_53] : memref<1x16x64xf32, #tpu.memory_space<vmem>>, vector<1x16x64xf32>
    %99 = vector.shape_cast %98 : vector<1x16x64xf32> to vector<16x64xf32>
    %100 = vector.shape_cast %97 : vector<16x64xf32> to vector<1x16x64xf32>
    tpu.vector_store %arg4[%c0_51, %c0_52, %c0_53], %100 {strides = array<i32>} : memref<1x16x64xf32, #tpu.memory_space<vmem>>, vector<1x16x64xf32>,
    return
  }
  func.func @transform_0(%arg0: i32) -> (i32, i32, i32) {
    %c0_i32 = arith.constant 0 : i32
    %c0_i32_0 = arith.constant 0 : i32
    %c0_i32_1 = arith.constant 0 : i32
    return %arg0, %c0_i32, %c0_i32_0 : i32, i32, i32
  }
  func.func @transform_1(%arg0: i32) -> (i32, i32, i32) {
    %c0_i32 = arith.constant 0 : i32
    %c0_i32_0 = arith.constant 0 : i32
    %c0_i32_1 = arith.constant 0 : i32
    %c0_i32_2 = arith.constant 0 : i32
    return %c0_i32, %c0_i32_0, %c0_i32_1 : i32, i32, i32
  }
  func.func @transform_2(%arg0: i32) -> (i32, i32) {
    %c0_i32 = arith.constant 0 : i32
    %c0_i32_0 = arith.constant 0 : i32
    %c0_i32_1 = arith.constant 0 : i32
    return %c0_i32, %c0_i32_0 : i32, i32
  }
  func.func @transform_3(%arg0: i32) -> (i32, i32, i32) {
    %c0_i32 = arith.constant 0 : i32
    %c0_i32_0 = arith.constant 0 : i32
    %c0_i32_1 = arith.constant 0 : i32
    return %arg0, %c0_i32, %c0_i32_0 : i32, i32, i32
  }
}

module attributes {stable_mosaic.version = 11 : i64} {
  func.func @dense_block_kernel(%arg0: i32, %arg1: memref<1x16x64xf32, #tpu.memory_space<vmem>>, %arg2: memref<1x16x64xf32, #tpu.memory_space<vmem>>, %arg3: memref<64x64xbf16, #tpu.memory_space<vmem>>, %arg4: memref<1x64xf32, #tpu.memory_space<vmem>>, %arg5: memref<64x64xbf16, #tpu.memory_space<vmem>>, %arg6: memref<1x64xf32, #tpu.memory_space<vmem>>, %arg7: memref<1x16x64xf32, #tpu.memory_space<vmem>>) attributes {dimension_semantics = [#tpu.dimension_semantics<parallel>], iteration_bounds = array<i64: 2>, scalar_prefetch = 0 : i64, scratch_operands = 0 : i64, tpu.core_type = #tpu.core_type<tc>, window_params = [{transform_indices = @transform_0, window_bounds = array<i64: 1, 16, 64>}, {transform_indices = @transform_1, window_bounds = array<i64: 1, 16, 64>}, {pipeline_mode = #tpu.pipeline_mode<synchronous>, transform_indices = @transform_2, window_bounds = array<i64: 64, 64>}, {pipeline_mode = #tpu.pipeline_mode<synchronous>, transform_indices = @transform_3, window_bounds = array<i64: 1, 64>}, {pipeline_mode = #tpu.pipeline_mode<synchronous>, transform_indices = @transform_4, window_bounds = array<i64: 64, 64>}, {pipeline_mode = #tpu.pipeline_mode<synchronous>, transform_indices = @transform_5, window_bounds = array<i64: 1, 64>}, {transform_indices = @transform_6, window_bounds = array<i64: 1, 16, 64>}]} {
    %c0 = arith.constant 0 : index
    %c0_0 = arith.constant 0 : index
    %c0_1 = arith.constant 0 : index
    %0 = vector.load %arg1[%c0, %c0_0, %c0_1] : memref<1x16x64xf32, #tpu.memory_space<vmem>>, vector<1x16x64xf32>
    %1 = vector.shape_cast %0 : vector<1x16x64xf32> to vector<16x64xf32>
    %c0_2 = arith.constant 0 : index
    %c0_3 = arith.constant 0 : index
    %c0_4 = arith.constant 0 : index
    %2 = vector.load %arg2[%c0_2, %c0_3, %c0_4] : memref<1x16x64xf32, #tpu.memory_space<vmem>>, vector<1x16x64xf32>
    %3 = vector.shape_cast %2 : vector<1x16x64xf32> to vector<16x64xf32>
    %4 = arith.addf %1, %3 : vector<16x64xf32>
    %5 = arith.truncf %4 : vector<16x64xf32> to vector<16x64xbf16>
    %c0_5 = arith.constant 0 : index
    %c0_6 = arith.constant 0 : index
    %6 = vector.load %arg3[%c0_5, %c0_6] : memref<64x64xbf16, #tpu.memory_space<vmem>>, vector<64x64xbf16>
    %cst = arith.constant dense<0.000000e+00> : vector<16x64xf32>
    %7 = tpu.matmul %5, %6, %cst {dimension_numbers = #tpu.dot_dimension_numbers<[1], [0], [0], [1], [0, 0, 1, 1], [], []>} : vector<16x64xbf16>, vector<64x64xbf16>, vector<16x64xf32> -> vector<16x64xf32>
    %c0_7 = arith.constant 0 : index
    %c0_8 = arith.constant 0 : index
    %8 = vector.load %arg4[%c0_7, %c0_8] : memref<1x64xf32, #tpu.memory_space<vmem>>, vector<1x64xf32>
    %9 = vector.broadcast %8 : vector<1x64xf32> to vector<16x64xf32>
    %10 = arith.addf %7, %9 : vector<16x64xf32>
    %cst_9 = arith.constant 0.000000e+00 : f32
    %11 = vector.broadcast %cst_9 : f32 to vector<16x64xf32>
    %12 = arith.cmpf oge, %10, %11 : vector<16x64xf32>
    %cst_10 = arith.constant 2.000000e-01 : f32
    %13 = vector.broadcast %cst_10 : f32 to vector<16x64xf32>
    %14 = arith.mulf %10, %13 : vector<16x64xf32>
    %15 = arith.select %12, %10, %14 : vector<16x64xi1>, vector<16x64xf32>
    %16 = arith.addf %15, %3 : vector<16x64xf32>
    %17 = arith.truncf %16 : vector<16x64xf32> to vector<16x64xbf16>
    %c0_11 = arith.constant 0 : index
    %c0_12 = arith.constant 0 : index
    %18 = vector.load %arg5[%c0_11, %c0_12] : memref<64x64xbf16, #tpu.memory_space<vmem>>, vector<64x64xbf16>
    %cst_13 = arith.constant dense<0.000000e+00> : vector<16x64xf32>
    %19 = tpu.matmul %17, %18, %cst_13 {dimension_numbers = #tpu.dot_dimension_numbers<[1], [0], [0], [1], [0, 0, 1, 1], [], []>} : vector<16x64xbf16>, vector<64x64xbf16>, vector<16x64xf32> -> vector<16x64xf32>
    %c0_14 = arith.constant 0 : index
    %c0_15 = arith.constant 0 : index
    %20 = vector.load %arg6[%c0_14, %c0_15] : memref<1x64xf32, #tpu.memory_space<vmem>>, vector<1x64xf32>
    %21 = vector.broadcast %20 : vector<1x64xf32> to vector<16x64xf32>
    %22 = arith.addf %19, %21 : vector<16x64xf32>
    %cst_16 = arith.constant 0.000000e+00 : f32
    %23 = vector.broadcast %cst_16 : f32 to vector<16x64xf32>
    %24 = arith.cmpf oge, %22, %23 : vector<16x64xf32>
    %cst_17 = arith.constant 2.000000e-01 : f32
    %25 = vector.broadcast %cst_17 : f32 to vector<16x64xf32>
    %26 = arith.mulf %22, %25 : vector<16x64xf32>
    %27 = arith.select %24, %22, %26 : vector<16x64xi1>, vector<16x64xf32>
    %cst_18 = arith.constant dense<0.000000e+00> : vector<64xf32>
    %28 = vector.multi_reduction <add>, %27, %cst_18 [0] : vector<16x64xf32> to vector<64xf32>
    %29 = vector.shape_cast %28 : vector<64xf32> to vector<1x64xf32>
    %cst_19 = arith.constant 1.600000e+01 : f32
    %30 = vector.broadcast %cst_19 : f32 to vector<1x64xf32>
    %31 = arith.divf %29, %30 : vector<1x64xf32>
    %32 = vector.broadcast %31 : vector<1x64xf32> to vector<16x64xf32>
    %33 = arith.subf %27, %32 : vector<16x64xf32>
    %34 = arith.mulf %33, %33 : vector<16x64xf32>
    %cst_20 = arith.constant dense<0.000000e+00> : vector<64xf32>
    %35 = vector.multi_reduction <add>, %34, %cst_20 [0] : vector<16x64xf32> to vector<64xf32>
    %36 = vector.shape_cast %35 : vector<64xf32> to vector<1x64xf32>
    %cst_21 = arith.constant 1.600000e+01 : f32
    %37 = vector.broadcast %cst_21 : f32 to vector<1x64xf32>
    %38 = arith.divf %36, %37 : vector<1x64xf32>
    %cst_22 = arith.constant 9.99999974E-6 : f32
    %39 = vector.broadcast %cst_22 : f32 to vector<1x64xf32>
    %40 = arith.addf %38, %39 : vector<1x64xf32>
    %41 = math.rsqrt %40 : vector<1x64xf32>
    %42 = vector.broadcast %41 : vector<1x64xf32> to vector<16x64xf32>
    %43 = arith.mulf %33, %42 : vector<16x64xf32>
    %44 = arith.addf %43, %1 : vector<16x64xf32>
    %c0_23 = arith.constant 0 : index
    %c0_24 = arith.constant 0 : index
    %c0_25 = arith.constant 0 : index
    %45 = vector.load %arg7[%c0_23, %c0_24, %c0_25] : memref<1x16x64xf32, #tpu.memory_space<vmem>>, vector<1x16x64xf32>
    %46 = vector.shape_cast %45 : vector<1x16x64xf32> to vector<16x64xf32>
    %47 = vector.shape_cast %44 : vector<16x64xf32> to vector<1x16x64xf32>
    tpu.vector_store %arg7[%c0_23, %c0_24, %c0_25], %47 {strides = array<i32>} : memref<1x16x64xf32, #tpu.memory_space<vmem>>, vector<1x16x64xf32>,
    return
  }
  func.func @transform_0(%arg0: i32) -> (i32, i32, i32) {
    %c0_i32 = arith.constant 0 : i32
    %c0_i32_0 = arith.constant 0 : i32
    %c0_i32_1 = arith.constant 0 : i32
    return %arg0, %c0_i32, %c0_i32_0 : i32, i32, i32
  }
  func.func @transform_1(%arg0: i32) -> (i32, i32, i32) {
    %c0_i32 = arith.constant 0 : i32
    %c0_i32_0 = arith.constant 0 : i32
    %c0_i32_1 = arith.constant 0 : i32
    return %arg0, %c0_i32, %c0_i32_0 : i32, i32, i32
  }
  func.func @transform_2(%arg0: i32) -> (i32, i32) {
    %c0_i32 = arith.constant 0 : i32
    %c0_i32_0 = arith.constant 0 : i32
    %c0_i32_1 = arith.constant 0 : i32
    return %c0_i32, %c0_i32_0 : i32, i32
  }
  func.func @transform_3(%arg0: i32) -> (i32, i32) {
    %c0_i32 = arith.constant 0 : i32
    %c0_i32_0 = arith.constant 0 : i32
    %c0_i32_1 = arith.constant 0 : i32
    return %c0_i32, %c0_i32_0 : i32, i32
  }
  func.func @transform_4(%arg0: i32) -> (i32, i32) {
    %c0_i32 = arith.constant 0 : i32
    %c0_i32_0 = arith.constant 0 : i32
    %c0_i32_1 = arith.constant 0 : i32
    return %c0_i32, %c0_i32_0 : i32, i32
  }
  func.func @transform_5(%arg0: i32) -> (i32, i32) {
    %c0_i32 = arith.constant 0 : i32
    %c0_i32_0 = arith.constant 0 : i32
    %c0_i32_1 = arith.constant 0 : i32
    return %c0_i32, %c0_i32_0 : i32, i32
  }
  func.func @transform_6(%arg0: i32) -> (i32, i32, i32) {
    %c0_i32 = arith.constant 0 : i32
    %c0_i32_0 = arith.constant 0 : i32
    %c0_i32_1 = arith.constant 0 : i32
    return %arg0, %c0_i32, %c0_i32_0 : i32, i32, i32
  }
}

module attributes {stable_mosaic.version = 11 : i64} {
  func.func @bilstm_kernel(%arg0: i32, %arg1: i32, %arg2: memref<1x16x64xf32, #tpu.memory_space<vmem>>, %arg3: memref<1x16x64xf32, #tpu.memory_space<vmem>>, %arg4: memref<1x64x128xbf16, #tpu.memory_space<vmem>>, %arg5: memref<1x32x128xbf16, #tpu.memory_space<vmem>>, %arg6: memref<1x1x128xf32, #tpu.memory_space<vmem>>, %arg7: memref<1x1x16x32xf32, #tpu.memory_space<vmem>>, %arg8: memref<16x32xf32, #tpu.memory_space<vmem>>, %arg9: memref<16x32xf32, #tpu.memory_space<vmem>>) attributes {dimension_semantics = [#tpu.dimension_semantics<parallel>, #tpu.dimension_semantics<arbitrary>], iteration_bounds = array<i64: 2, 2>, scalar_prefetch = 0 : i64, scratch_operands = 2 : i64, tpu.core_type = #tpu.core_type<tc>, window_params = [{transform_indices = @transform_0, window_bounds = array<i64: 1, 16, 64>}, {transform_indices = @transform_1, window_bounds = array<i64: 1, 16, 64>}, {transform_indices = @transform_2, window_bounds = array<i64: 1, 64, 128>}, {transform_indices = @transform_3, window_bounds = array<i64: 1, 32, 128>}, {transform_indices = @transform_4, window_bounds = array<i64: 1, 1, 128>}, {transform_indices = @transform_5, window_bounds = array<i64: 1, 1, 16, 32>}]} {
    %c0_i32 = arith.constant 0 : i32
    %0 = arith.cmpi eq, %arg1, %c0_i32 : i32
    %1 = arith.extui %0 : i1 to i32
    %c0_i32_0 = arith.constant 0 : i32
    %2 = arith.cmpi ne, %1, %c0_i32_0 : i32
    scf.if %2 {
      %cst_31 = arith.constant 0.000000e+00 : f32
      %53 = vector.broadcast %cst_31 : f32 to vector<16x32xf32>
      %c0_32 = arith.constant 0 : index
      %c0_33 = arith.constant 0 : index
      %54 = vector.load %arg8[%c0_32, %c0_33] : memref<16x32xf32, #tpu.memory_space<vmem>>, vector<16x32xf32>
      tpu.vector_store %arg8[%c0_32, %c0_33], %53 {strides = array<i32>} : memref<16x32xf32, #tpu.memory_space<vmem>>, vector<16x32xf32>,
      %cst_34 = arith.constant 0.000000e+00 : f32
      %55 = vector.broadcast %cst_34 : f32 to vector<16x32xf32>
      %c0_35 = arith.constant 0 : index
      %c0_36 = arith.constant 0 : index
      %56 = vector.load %arg9[%c0_35, %c0_36] : memref<16x32xf32, #tpu.memory_space<vmem>>, vector<16x32xf32>
      tpu.vector_store %arg9[%c0_35, %c0_36], %55 {strides = array<i32>} : memref<16x32xf32, #tpu.memory_space<vmem>>, vector<16x32xf32>,
    } else {
    }
    %c0 = arith.constant 0 : index
    %c0_1 = arith.constant 0 : index
    %c0_2 = arith.constant 0 : index
    %3 = vector.load %arg2[%c0, %c0_1, %c0_2] : memref<1x16x64xf32, #tpu.memory_space<vmem>>, vector<1x16x64xf32>
    %4 = vector.shape_cast %3 : vector<1x16x64xf32> to vector<16x64xf32>
    %c0_3 = arith.constant 0 : index
    %c0_4 = arith.constant 0 : index
    %c0_5 = arith.constant 0 : index
    %5 = vector.load %arg3[%c0_3, %c0_4, %c0_5] : memref<1x16x64xf32, #tpu.memory_space<vmem>>, vector<1x16x64xf32>
    %6 = vector.shape_cast %5 : vector<1x16x64xf32> to vector<16x64xf32>
    %7 = arith.addf %4, %6 : vector<16x64xf32>
    %8 = arith.truncf %7 : vector<16x64xf32> to vector<16x64xbf16>
    %c0_6 = arith.constant 0 : index
    %c0_7 = arith.constant 0 : index
    %c0_8 = arith.constant 0 : index
    %9 = vector.load %arg4[%c0_6, %c0_7, %c0_8] : memref<1x64x128xbf16, #tpu.memory_space<vmem>>, vector<1x64x128xbf16>
    %10 = vector.shape_cast %9 : vector<1x64x128xbf16> to vector<64x128xbf16>
    %cst = arith.constant dense<0.000000e+00> : vector<16x128xf32>
    %11 = tpu.matmul %8, %10, %cst {dimension_numbers = #tpu.dot_dimension_numbers<[1], [0], [0], [1], [0, 0, 1, 1], [], []>} : vector<16x64xbf16>, vector<64x128xbf16>, vector<16x128xf32> -> vector<16x128xf32>
    %c0_9 = arith.constant 0 : index
    %c0_10 = arith.constant 0 : index
    %12 = vector.load %arg8[%c0_9, %c0_10] : memref<16x32xf32, #tpu.memory_space<vmem>>, vector<16x32xf32>
    %13 = arith.truncf %12 : vector<16x32xf32> to vector<16x32xbf16>
    %c0_11 = arith.constant 0 : index
    %c0_12 = arith.constant 0 : index
    %c0_13 = arith.constant 0 : index
    %14 = vector.load %arg5[%c0_11, %c0_12, %c0_13] : memref<1x32x128xbf16, #tpu.memory_space<vmem>>, vector<1x32x128xbf16>
    %15 = vector.shape_cast %14 : vector<1x32x128xbf16> to vector<32x128xbf16>
    %cst_14 = arith.constant dense<0.000000e+00> : vector<16x128xf32>
    %16 = tpu.matmul %13, %15, %cst_14 {dimension_numbers = #tpu.dot_dimension_numbers<[1], [0], [0], [1], [0, 0, 1, 1], [], []>} : vector<16x32xbf16>, vector<32x128xbf16>, vector<16x128xf32> -> vector<16x128xf32>
    %17 = arith.addf %11, %16 : vector<16x128xf32>
    %c0_15 = arith.constant 0 : index
    %c0_16 = arith.constant 0 : index
    %c0_17 = arith.constant 0 : index
    %18 = vector.load %arg6[%c0_15, %c0_16, %c0_17] : memref<1x1x128xf32, #tpu.memory_space<vmem>>, vector<1x1x128xf32>
    %19 = vector.shape_cast %18 : vector<1x1x128xf32> to vector<1x128xf32>
    %20 = vector.broadcast %19 : vector<1x128xf32> to vector<16x128xf32>
    %21 = arith.addf %17, %20 : vector<16x128xf32>
    %22 = vector.extract_strided_slice %21 {offsets = [0, 0], sizes = [16, 32], strides = [1, 1]} : vector<16x128xf32> to vector<16x32xf32>
    %23 = arith.negf %22 : vector<16x32xf32>
    %24 = math.exp %23 : vector<16x32xf32>
    %cst_18 = arith.constant 1.000000e+00 : f32
    %25 = vector.broadcast %cst_18 : f32 to vector<16x32xf32>
    %26 = arith.addf %25, %24 : vector<16x32xf32>
    %27 = arith.divf %25, %26 : vector<16x32xf32>
    %28 = vector.extract_strided_slice %21 {offsets = [0, 32], sizes = [16, 32], strides = [1, 1]} : vector<16x128xf32> to vector<16x32xf32>
    %29 = arith.negf %28 : vector<16x32xf32>
    %30 = math.exp %29 : vector<16x32xf32>
    %cst_19 = arith.constant 1.000000e+00 : f32
    %31 = vector.broadcast %cst_19 : f32 to vector<16x32xf32>
    %32 = arith.addf %31, %30 : vector<16x32xf32>
    %33 = arith.divf %31, %32 : vector<16x32xf32>
    %34 = vector.extract_strided_slice %21 {offsets = [0, 64], sizes = [16, 32], strides = [1, 1]} : vector<16x128xf32> to vector<16x32xf32>
    %35 = math.tanh %34 : vector<16x32xf32>
    %36 = vector.extract_strided_slice %21 {offsets = [0, 96], sizes = [16, 32], strides = [1, 1]} : vector<16x128xf32> to vector<16x32xf32>
    %37 = arith.negf %36 : vector<16x32xf32>
    %38 = math.exp %37 : vector<16x32xf32>
    %cst_20 = arith.constant 1.000000e+00 : f32
    %39 = vector.broadcast %cst_20 : f32 to vector<16x32xf32>
    %40 = arith.addf %39, %38 : vector<16x32xf32>
    %41 = arith.divf %39, %40 : vector<16x32xf32>
    %c0_21 = arith.constant 0 : index
    %c0_22 = arith.constant 0 : index
    %42 = vector.load %arg9[%c0_21, %c0_22] : memref<16x32xf32, #tpu.memory_space<vmem>>, vector<16x32xf32>
    %43 = arith.mulf %33, %42 : vector<16x32xf32>
    %44 = arith.mulf %27, %35 : vector<16x32xf32>
    %45 = arith.addf %43, %44 : vector<16x32xf32>
    %46 = math.tanh %45 : vector<16x32xf32>
    %47 = arith.mulf %41, %46 : vector<16x32xf32>
    %c0_23 = arith.constant 0 : index
    %c0_24 = arith.constant 0 : index
    %48 = vector.load %arg9[%c0_23, %c0_24] : memref<16x32xf32, #tpu.memory_space<vmem>>, vector<16x32xf32>
    tpu.vector_store %arg9[%c0_23, %c0_24], %45 {strides = array<i32>} : memref<16x32xf32, #tpu.memory_space<vmem>>, vector<16x32xf32>,
    %c0_25 = arith.constant 0 : index
    %c0_26 = arith.constant 0 : index
    %49 = vector.load %arg8[%c0_25, %c0_26] : memref<16x32xf32, #tpu.memory_space<vmem>>, vector<16x32xf32>
    tpu.vector_store %arg8[%c0_25, %c0_26], %47 {strides = array<i32>} : memref<16x32xf32, #tpu.memory_space<vmem>>, vector<16x32xf32>,
    %c0_27 = arith.constant 0 : index
    %c0_28 = arith.constant 0 : index
    %c0_29 = arith.constant 0 : index
    %c0_30 = arith.constant 0 : index
    %50 = vector.load %arg7[%c0_27, %c0_28, %c0_29, %c0_30] : memref<1x1x16x32xf32, #tpu.memory_space<vmem>>, vector<1x1x16x32xf32>
    %51 = vector.shape_cast %50 : vector<1x1x16x32xf32> to vector<16x32xf32>
    %52 = vector.shape_cast %47 : vector<16x32xf32> to vector<1x1x16x32xf32>
    tpu.vector_store %arg7[%c0_27, %c0_28, %c0_29, %c0_30], %52 {strides = array<i32>} : memref<1x1x16x32xf32, #tpu.memory_space<vmem>>, vector<1x1x16x32xf32>,
    return
  }
  func.func @transform_0(%arg0: i32, %arg1: i32) -> (i32, i32, i32) {
    %c2_i32 = arith.constant 2 : i32
    %0 = arith.muli %c2_i32, %arg1 : i32
    %c1_i32 = arith.constant 1 : i32
    %1 = arith.subi %c1_i32, %0 : i32
    %2 = arith.muli %arg0, %1 : i32
    %3 = arith.addi %arg1, %2 : i32
    %c0_i32 = arith.constant 0 : i32
    %c0_i32_0 = arith.constant 0 : i32
    %c0_i32_1 = arith.constant 0 : i32
    return %3, %c0_i32, %c0_i32_0 : i32, i32, i32
  }
  func.func @transform_1(%arg0: i32, %arg1: i32) -> (i32, i32, i32) {
    %c2_i32 = arith.constant 2 : i32
    %0 = arith.muli %c2_i32, %arg1 : i32
    %c1_i32 = arith.constant 1 : i32
    %1 = arith.subi %c1_i32, %0 : i32
    %2 = arith.muli %arg0, %1 : i32
    %3 = arith.addi %arg1, %2 : i32
    %c0_i32 = arith.constant 0 : i32
    %c0_i32_0 = arith.constant 0 : i32
    %c0_i32_1 = arith.constant 0 : i32
    return %3, %c0_i32, %c0_i32_0 : i32, i32, i32
  }
  func.func @transform_2(%arg0: i32, %arg1: i32) -> (i32, i32, i32) {
    %c0_i32 = arith.constant 0 : i32
    %c0_i32_0 = arith.constant 0 : i32
    %c0_i32_1 = arith.constant 0 : i32
    return %arg0, %c0_i32, %c0_i32_0 : i32, i32, i32
  }
  func.func @transform_3(%arg0: i32, %arg1: i32) -> (i32, i32, i32) {
    %c0_i32 = arith.constant 0 : i32
    %c0_i32_0 = arith.constant 0 : i32
    %c0_i32_1 = arith.constant 0 : i32
    return %arg0, %c0_i32, %c0_i32_0 : i32, i32, i32
  }
  func.func @transform_4(%arg0: i32, %arg1: i32) -> (i32, i32, i32) {
    %c0_i32 = arith.constant 0 : i32
    %c0_i32_0 = arith.constant 0 : i32
    %c0_i32_1 = arith.constant 0 : i32
    return %arg0, %c0_i32, %c0_i32_0 : i32, i32, i32
  }
  func.func @transform_5(%arg0: i32, %arg1: i32) -> (i32, i32, i32, i32) {
    %c2_i32 = arith.constant 2 : i32
    %0 = arith.muli %c2_i32, %arg1 : i32
    %c1_i32 = arith.constant 1 : i32
    %1 = arith.subi %c1_i32, %0 : i32
    %2 = arith.muli %arg0, %1 : i32
    %3 = arith.addi %arg1, %2 : i32
    %c0_i32 = arith.constant 0 : i32
    %c0_i32_0 = arith.constant 0 : i32
    %c0_i32_1 = arith.constant 0 : i32
    return %arg0, %3, %c0_i32, %c0_i32_0 : i32, i32, i32, i32
  }
}

module attributes {stable_mosaic.version = 11 : i64} {
  func.func @conv_block_kernel(%arg0: i32, %arg1: memref<1x16x64xf32, #tpu.memory_space<vmem>>, %arg2: memref<1x16x64xf32, #tpu.memory_space<vmem>>, %arg3: memref<3x64x64xbf16, #tpu.memory_space<vmem>>, %arg4: memref<1x64xf32, #tpu.memory_space<vmem>>, %arg5: memref<3x64x64xbf16, #tpu.memory_space<vmem>>, %arg6: memref<1x64xf32, #tpu.memory_space<vmem>>, %arg7: memref<1x16x64xf32, #tpu.memory_space<vmem>>) attributes {dimension_semantics = [#tpu.dimension_semantics<parallel>], iteration_bounds = array<i64: 2>, scalar_prefetch = 0 : i64, scratch_operands = 0 : i64, tpu.core_type = #tpu.core_type<tc>, window_params = [{transform_indices = @transform_0, window_bounds = array<i64: 1, 16, 64>}, {transform_indices = @transform_1, window_bounds = array<i64: 1, 16, 64>}, {pipeline_mode = #tpu.pipeline_mode<synchronous>, transform_indices = @transform_2, window_bounds = array<i64: 3, 64, 64>}, {pipeline_mode = #tpu.pipeline_mode<synchronous>, transform_indices = @transform_3, window_bounds = array<i64: 1, 64>}, {pipeline_mode = #tpu.pipeline_mode<synchronous>, transform_indices = @transform_4, window_bounds = array<i64: 3, 64, 64>}, {pipeline_mode = #tpu.pipeline_mode<synchronous>, transform_indices = @transform_5, window_bounds = array<i64: 1, 64>}, {transform_indices = @transform_6, window_bounds = array<i64: 1, 16, 64>}]} {
    %c0 = arith.constant 0 : index
    %c0_0 = arith.constant 0 : index
    %c0_1 = arith.constant 0 : index
    %0 = vector.load %arg1[%c0, %c0_0, %c0_1] : memref<1x16x64xf32, #tpu.memory_space<vmem>>, vector<1x16x64xf32>
    %1 = vector.shape_cast %0 : vector<1x16x64xf32> to vector<16x64xf32>
    %c0_2 = arith.constant 0 : index
    %c0_3 = arith.constant 0 : index
    %c0_4 = arith.constant 0 : index
    %2 = vector.load %arg2[%c0_2, %c0_3, %c0_4] : memref<1x16x64xf32, #tpu.memory_space<vmem>>, vector<1x16x64xf32>
    %3 = vector.shape_cast %2 : vector<1x16x64xf32> to vector<16x64xf32>
    %4 = arith.addf %1, %3 : vector<16x64xf32>
    %5 = vector.extract_strided_slice %4 {offsets = [1, 0], sizes = [1, 64], strides = [1, 1]} : vector<16x64xf32> to vector<1x64xf32>
    %6 = vector.extract_strided_slice %4 {offsets = [14, 0], sizes = [1, 64], strides = [1, 1]} : vector<16x64xf32> to vector<1x64xf32>
    %7 = tpu.concatenate %5, %4, %6 in 0 : vector<1x64xf32>, vector<16x64xf32>, vector<1x64xf32> -> vector<18x64xf32>
    %c0_5 = arith.constant 0 : index
    %c0_6 = arith.constant 0 : index
    %8 = vector.load %arg4[%c0_5, %c0_6] : memref<1x64xf32, #tpu.memory_space<vmem>>, vector<1x64xf32>
    %9 = vector.extract_strided_slice %7 {offsets = [0, 0], sizes = [16, 64], strides = [1, 1]} : vector<18x64xf32> to vector<16x64xf32>
    %10 = arith.truncf %9 : vector<16x64xf32> to vector<16x64xbf16>
    %c0_7 = arith.constant 0 : index
    %c0_8 = arith.constant 0 : index
    %c0_9 = arith.constant 0 : index
    %11 = vector.load %arg3[%c0_7, %c0_8, %c0_9] : memref<3x64x64xbf16, #tpu.memory_space<vmem>>, vector<1x64x64xbf16>
    %12 = vector.shape_cast %11 : vector<1x64x64xbf16> to vector<64x64xbf16>
    %cst = arith.constant dense<0.000000e+00> : vector<16x64xf32>
    %13 = tpu.matmul %10, %12, %cst {dimension_numbers = #tpu.dot_dimension_numbers<[1], [0], [0], [1], [0, 0, 1, 1], [], []>} : vector<16x64xbf16>, vector<64x64xbf16>, vector<16x64xf32> -> vector<16x64xf32>
    %14 = vector.extract_strided_slice %7 {offsets = [1, 0], sizes = [16, 64], strides = [1, 1]} : vector<18x64xf32> to vector<16x64xf32>
    %15 = arith.truncf %14 : vector<16x64xf32> to vector<16x64xbf16>
    %c1 = arith.constant 1 : index
    %c0_10 = arith.constant 0 : index
    %c0_11 = arith.constant 0 : index
    %16 = vector.load %arg3[%c1, %c0_10, %c0_11] : memref<3x64x64xbf16, #tpu.memory_space<vmem>>, vector<1x64x64xbf16>
    %17 = vector.shape_cast %16 : vector<1x64x64xbf16> to vector<64x64xbf16>
    %cst_12 = arith.constant dense<0.000000e+00> : vector<16x64xf32>
    %18 = tpu.matmul %15, %17, %cst_12 {dimension_numbers = #tpu.dot_dimension_numbers<[1], [0], [0], [1], [0, 0, 1, 1], [], []>} : vector<16x64xbf16>, vector<64x64xbf16>, vector<16x64xf32> -> vector<16x64xf32>
    %19 = arith.addf %13, %18 : vector<16x64xf32>
    %20 = vector.extract_strided_slice %7 {offsets = [2, 0], sizes = [16, 64], strides = [1, 1]} : vector<18x64xf32> to vector<16x64xf32>
    %21 = arith.truncf %20 : vector<16x64xf32> to vector<16x64xbf16>
    %c2 = arith.constant 2 : index
    %c0_13 = arith.constant 0 : index
    %c0_14 = arith.constant 0 : index
    %22 = vector.load %arg3[%c2, %c0_13, %c0_14] : memref<3x64x64xbf16, #tpu.memory_space<vmem>>, vector<1x64x64xbf16>
    %23 = vector.shape_cast %22 : vector<1x64x64xbf16> to vector<64x64xbf16>
    %cst_15 = arith.constant dense<0.000000e+00> : vector<16x64xf32>
    %24 = tpu.matmul %21, %23, %cst_15 {dimension_numbers = #tpu.dot_dimension_numbers<[1], [0], [0], [1], [0, 0, 1, 1], [], []>} : vector<16x64xbf16>, vector<64x64xbf16>, vector<16x64xf32> -> vector<16x64xf32>
    %25 = arith.addf %19, %24 : vector<16x64xf32>
    %26 = vector.broadcast %8 : vector<1x64xf32> to vector<16x64xf32>
    %27 = arith.addf %25, %26 : vector<16x64xf32>
    %cst_16 = arith.constant 0.000000e+00 : f32
    %28 = vector.broadcast %cst_16 : f32 to vector<16x64xf32>
    %29 = arith.cmpf oge, %27, %28 : vector<16x64xf32>
    %cst_17 = arith.constant 2.000000e-01 : f32
    %30 = vector.broadcast %cst_17 : f32 to vector<16x64xf32>
    %31 = arith.mulf %27, %30 : vector<16x64xf32>
    %32 = arith.select %29, %27, %31 : vector<16x64xi1>, vector<16x64xf32>
    %33 = arith.addf %32, %3 : vector<16x64xf32>
    %34 = vector.extract_strided_slice %33 {offsets = [1, 0], sizes = [1, 64], strides = [1, 1]} : vector<16x64xf32> to vector<1x64xf32>
    %35 = vector.extract_strided_slice %33 {offsets = [14, 0], sizes = [1, 64], strides = [1, 1]} : vector<16x64xf32> to vector<1x64xf32>
    %36 = tpu.concatenate %34, %33, %35 in 0 : vector<1x64xf32>, vector<16x64xf32>, vector<1x64xf32> -> vector<18x64xf32>
    %c0_18 = arith.constant 0 : index
    %c0_19 = arith.constant 0 : index
    %37 = vector.load %arg6[%c0_18, %c0_19] : memref<1x64xf32, #tpu.memory_space<vmem>>, vector<1x64xf32>
    %38 = vector.extract_strided_slice %36 {offsets = [0, 0], sizes = [16, 64], strides = [1, 1]} : vector<18x64xf32> to vector<16x64xf32>
    %39 = arith.truncf %38 : vector<16x64xf32> to vector<16x64xbf16>
    %c0_20 = arith.constant 0 : index
    %c0_21 = arith.constant 0 : index
    %c0_22 = arith.constant 0 : index
    %40 = vector.load %arg5[%c0_20, %c0_21, %c0_22] : memref<3x64x64xbf16, #tpu.memory_space<vmem>>, vector<1x64x64xbf16>
    %41 = vector.shape_cast %40 : vector<1x64x64xbf16> to vector<64x64xbf16>
    %cst_23 = arith.constant dense<0.000000e+00> : vector<16x64xf32>
    %42 = tpu.matmul %39, %41, %cst_23 {dimension_numbers = #tpu.dot_dimension_numbers<[1], [0], [0], [1], [0, 0, 1, 1], [], []>} : vector<16x64xbf16>, vector<64x64xbf16>, vector<16x64xf32> -> vector<16x64xf32>
    %43 = vector.extract_strided_slice %36 {offsets = [1, 0], sizes = [16, 64], strides = [1, 1]} : vector<18x64xf32> to vector<16x64xf32>
    %44 = arith.truncf %43 : vector<16x64xf32> to vector<16x64xbf16>
    %c1_24 = arith.constant 1 : index
    %c0_25 = arith.constant 0 : index
    %c0_26 = arith.constant 0 : index
    %45 = vector.load %arg5[%c1_24, %c0_25, %c0_26] : memref<3x64x64xbf16, #tpu.memory_space<vmem>>, vector<1x64x64xbf16>
    %46 = vector.shape_cast %45 : vector<1x64x64xbf16> to vector<64x64xbf16>
    %cst_27 = arith.constant dense<0.000000e+00> : vector<16x64xf32>
    %47 = tpu.matmul %44, %46, %cst_27 {dimension_numbers = #tpu.dot_dimension_numbers<[1], [0], [0], [1], [0, 0, 1, 1], [], []>} : vector<16x64xbf16>, vector<64x64xbf16>, vector<16x64xf32> -> vector<16x64xf32>
    %48 = arith.addf %42, %47 : vector<16x64xf32>
    %49 = vector.extract_strided_slice %36 {offsets = [2, 0], sizes = [16, 64], strides = [1, 1]} : vector<18x64xf32> to vector<16x64xf32>
    %50 = arith.truncf %49 : vector<16x64xf32> to vector<16x64xbf16>
    %c2_28 = arith.constant 2 : index
    %c0_29 = arith.constant 0 : index
    %c0_30 = arith.constant 0 : index
    %51 = vector.load %arg5[%c2_28, %c0_29, %c0_30] : memref<3x64x64xbf16, #tpu.memory_space<vmem>>, vector<1x64x64xbf16>
    %52 = vector.shape_cast %51 : vector<1x64x64xbf16> to vector<64x64xbf16>
    %cst_31 = arith.constant dense<0.000000e+00> : vector<16x64xf32>
    %53 = tpu.matmul %50, %52, %cst_31 {dimension_numbers = #tpu.dot_dimension_numbers<[1], [0], [0], [1], [0, 0, 1, 1], [], []>} : vector<16x64xbf16>, vector<64x64xbf16>, vector<16x64xf32> -> vector<16x64xf32>
    %54 = arith.addf %48, %53 : vector<16x64xf32>
    %55 = vector.broadcast %37 : vector<1x64xf32> to vector<16x64xf32>
    %56 = arith.addf %54, %55 : vector<16x64xf32>
    %cst_32 = arith.constant 0.000000e+00 : f32
    %57 = vector.broadcast %cst_32 : f32 to vector<16x64xf32>
    %58 = arith.cmpf oge, %56, %57 : vector<16x64xf32>
    %cst_33 = arith.constant 2.000000e-01 : f32
    %59 = vector.broadcast %cst_33 : f32 to vector<16x64xf32>
    %60 = arith.mulf %56, %59 : vector<16x64xf32>
    %61 = arith.select %58, %56, %60 : vector<16x64xi1>, vector<16x64xf32>
    %cst_34 = arith.constant dense<0.000000e+00> : vector<64xf32>
    %62 = vector.multi_reduction <add>, %61, %cst_34 [0] : vector<16x64xf32> to vector<64xf32>
    %63 = vector.shape_cast %62 : vector<64xf32> to vector<1x64xf32>
    %cst_35 = arith.constant 1.600000e+01 : f32
    %64 = vector.broadcast %cst_35 : f32 to vector<1x64xf32>
    %65 = arith.divf %63, %64 : vector<1x64xf32>
    %66 = vector.broadcast %65 : vector<1x64xf32> to vector<16x64xf32>
    %67 = arith.subf %61, %66 : vector<16x64xf32>
    %68 = arith.mulf %67, %67 : vector<16x64xf32>
    %cst_36 = arith.constant dense<0.000000e+00> : vector<64xf32>
    %69 = vector.multi_reduction <add>, %68, %cst_36 [0] : vector<16x64xf32> to vector<64xf32>
    %70 = vector.shape_cast %69 : vector<64xf32> to vector<1x64xf32>
    %cst_37 = arith.constant 1.600000e+01 : f32
    %71 = vector.broadcast %cst_37 : f32 to vector<1x64xf32>
    %72 = arith.divf %70, %71 : vector<1x64xf32>
    %cst_38 = arith.constant 9.99999974E-6 : f32
    %73 = vector.broadcast %cst_38 : f32 to vector<1x64xf32>
    %74 = arith.addf %72, %73 : vector<1x64xf32>
    %75 = math.rsqrt %74 : vector<1x64xf32>
    %76 = vector.broadcast %75 : vector<1x64xf32> to vector<16x64xf32>
    %77 = arith.mulf %67, %76 : vector<16x64xf32>
    %78 = arith.addf %77, %1 : vector<16x64xf32>
    %c0_39 = arith.constant 0 : index
    %c0_40 = arith.constant 0 : index
    %c0_41 = arith.constant 0 : index
    %79 = vector.load %arg7[%c0_39, %c0_40, %c0_41] : memref<1x16x64xf32, #tpu.memory_space<vmem>>, vector<1x16x64xf32>
    %80 = vector.shape_cast %79 : vector<1x16x64xf32> to vector<16x64xf32>
    %81 = vector.shape_cast %78 : vector<16x64xf32> to vector<1x16x64xf32>
    tpu.vector_store %arg7[%c0_39, %c0_40, %c0_41], %81 {strides = array<i32>} : memref<1x16x64xf32, #tpu.memory_space<vmem>>, vector<1x16x64xf32>,
    return
  }
  func.func @transform_0(%arg0: i32) -> (i32, i32, i32) {
    %c0_i32 = arith.constant 0 : i32
    %c0_i32_0 = arith.constant 0 : i32
    %c0_i32_1 = arith.constant 0 : i32
    return %arg0, %c0_i32, %c0_i32_0 : i32, i32, i32
  }
  func.func @transform_1(%arg0: i32) -> (i32, i32, i32) {
    %c0_i32 = arith.constant 0 : i32
    %c0_i32_0 = arith.constant 0 : i32
    %c0_i32_1 = arith.constant 0 : i32
    return %arg0, %c0_i32, %c0_i32_0 : i32, i32, i32
  }
  func.func @transform_2(%arg0: i32) -> (i32, i32, i32) {
    %c0_i32 = arith.constant 0 : i32
    %c0_i32_0 = arith.constant 0 : i32
    %c0_i32_1 = arith.constant 0 : i32
    %c0_i32_2 = arith.constant 0 : i32
    return %c0_i32, %c0_i32_0, %c0_i32_1 : i32, i32, i32
  }
  func.func @transform_3(%arg0: i32) -> (i32, i32) {
    %c0_i32 = arith.constant 0 : i32
    %c0_i32_0 = arith.constant 0 : i32
    %c0_i32_1 = arith.constant 0 : i32
    return %c0_i32, %c0_i32_0 : i32, i32
  }
  func.func @transform_4(%arg0: i32) -> (i32, i32, i32) {
    %c0_i32 = arith.constant 0 : i32
    %c0_i32_0 = arith.constant 0 : i32
    %c0_i32_1 = arith.constant 0 : i32
    %c0_i32_2 = arith.constant 0 : i32
    return %c0_i32, %c0_i32_0, %c0_i32_1 : i32, i32, i32
  }
  func.func @transform_5(%arg0: i32) -> (i32, i32) {
    %c0_i32 = arith.constant 0 : i32
    %c0_i32_0 = arith.constant 0 : i32
    %c0_i32_1 = arith.constant 0 : i32
    return %c0_i32, %c0_i32_0 : i32, i32
  }
  func.func @transform_6(%arg0: i32) -> (i32, i32, i32) {
    %c0_i32 = arith.constant 0 : i32
    %c0_i32_0 = arith.constant 0 : i32
    %c0_i32_1 = arith.constant 0 : i32
    return %arg0, %c0_i32, %c0_i32_0 : i32, i32, i32
  }
}

module attributes {stable_mosaic.version = 11 : i64} {
  func.func @head_kernel(%arg0: i32, %arg1: memref<1x16x64xf32, #tpu.memory_space<vmem>>, %arg2: memref<2x1x16x32xf32, #tpu.memory_space<vmem>>, %arg3: memref<64x64xbf16, #tpu.memory_space<vmem>>, %arg4: memref<32x64xbf16, #tpu.memory_space<vmem>>, %arg5: memref<32x64xbf16, #tpu.memory_space<vmem>>, %arg6: memref<1x64xf32, #tpu.memory_space<vmem>>, %arg7: memref<16x64xbf16, #tpu.memory_space<vmem>>, %arg8: memref<16x1xf32, #tpu.memory_space<vmem>>, %arg9: memref<1x16x16xf32, #tpu.memory_space<vmem>>) attributes {dimension_semantics = [#tpu.dimension_semantics<parallel>], iteration_bounds = array<i64: 2>, scalar_prefetch = 0 : i64, scratch_operands = 0 : i64, tpu.core_type = #tpu.core_type<tc>, window_params = [{transform_indices = @transform_0, window_bounds = array<i64: 1, 16, 64>}, {transform_indices = @transform_1, window_bounds = array<i64: 2, 1, 16, 32>}, {pipeline_mode = #tpu.pipeline_mode<synchronous>, transform_indices = @transform_2, window_bounds = array<i64: 64, 64>}, {pipeline_mode = #tpu.pipeline_mode<synchronous>, transform_indices = @transform_3, window_bounds = array<i64: 32, 64>}, {pipeline_mode = #tpu.pipeline_mode<synchronous>, transform_indices = @transform_4, window_bounds = array<i64: 32, 64>}, {pipeline_mode = #tpu.pipeline_mode<synchronous>, transform_indices = @transform_5, window_bounds = array<i64: 1, 64>}, {pipeline_mode = #tpu.pipeline_mode<synchronous>, transform_indices = @transform_6, window_bounds = array<i64: 16, 64>}, {pipeline_mode = #tpu.pipeline_mode<synchronous>, transform_indices = @transform_7, window_bounds = array<i64: 16, 1>}, {transform_indices = @transform_8, window_bounds = array<i64: 1, 16, 16>}]} {
    %c0 = arith.constant 0 : index
    %c0_0 = arith.constant 0 : index
    %c0_1 = arith.constant 0 : index
    %0 = vector.load %arg1[%c0, %c0_0, %c0_1] : memref<1x16x64xf32, #tpu.memory_space<vmem>>, vector<1x16x64xf32>
    %1 = vector.shape_cast %0 : vector<1x16x64xf32> to vector<16x64xf32>
    %c0_2 = arith.constant 0 : index
    %c0_3 = arith.constant 0 : index
    %c0_4 = arith.constant 0 : index
    %c0_5 = arith.constant 0 : index
    %2 = vector.load %arg2[%c0_2, %c0_3, %c0_4, %c0_5] : memref<2x1x16x32xf32, #tpu.memory_space<vmem>>, vector<1x1x16x32xf32>
    %3 = vector.shape_cast %2 : vector<1x1x16x32xf32> to vector<16x32xf32>
    %c1 = arith.constant 1 : index
    %c0_6 = arith.constant 0 : index
    %c0_7 = arith.constant 0 : index
    %c0_8 = arith.constant 0 : index
    %4 = vector.load %arg2[%c1, %c0_6, %c0_7, %c0_8] : memref<2x1x16x32xf32, #tpu.memory_space<vmem>>, vector<1x1x16x32xf32>
    %5 = vector.shape_cast %4 : vector<1x1x16x32xf32> to vector<16x32xf32>
    %6 = arith.truncf %1 : vector<16x64xf32> to vector<16x64xbf16>
    %c0_9 = arith.constant 0 : index
    %c0_10 = arith.constant 0 : index
    %7 = vector.load %arg3[%c0_9, %c0_10] : memref<64x64xbf16, #tpu.memory_space<vmem>>, vector<64x64xbf16>
    %cst = arith.constant dense<0.000000e+00> : vector<16x64xf32>
    %8 = tpu.matmul %6, %7, %cst {dimension_numbers = #tpu.dot_dimension_numbers<[1], [0], [0], [1], [0, 0, 1, 1], [], []>} : vector<16x64xbf16>, vector<64x64xbf16>, vector<16x64xf32> -> vector<16x64xf32>
    %9 = arith.truncf %3 : vector<16x32xf32> to vector<16x32xbf16>
    %c0_11 = arith.constant 0 : index
    %c0_12 = arith.constant 0 : index
    %10 = vector.load %arg4[%c0_11, %c0_12] : memref<32x64xbf16, #tpu.memory_space<vmem>>, vector<32x64xbf16>
    %cst_13 = arith.constant dense<0.000000e+00> : vector<16x64xf32>
    %11 = tpu.matmul %9, %10, %cst_13 {dimension_numbers = #tpu.dot_dimension_numbers<[1], [0], [0], [1], [0, 0, 1, 1], [], []>} : vector<16x32xbf16>, vector<32x64xbf16>, vector<16x64xf32> -> vector<16x64xf32>
    %12 = arith.addf %8, %11 : vector<16x64xf32>
    %13 = arith.truncf %5 : vector<16x32xf32> to vector<16x32xbf16>
    %c0_14 = arith.constant 0 : index
    %c0_15 = arith.constant 0 : index
    %14 = vector.load %arg5[%c0_14, %c0_15] : memref<32x64xbf16, #tpu.memory_space<vmem>>, vector<32x64xbf16>
    %cst_16 = arith.constant dense<0.000000e+00> : vector<16x64xf32>
    %15 = tpu.matmul %13, %14, %cst_16 {dimension_numbers = #tpu.dot_dimension_numbers<[1], [0], [0], [1], [0, 0, 1, 1], [], []>} : vector<16x32xbf16>, vector<32x64xbf16>, vector<16x64xf32> -> vector<16x64xf32>
    %16 = arith.addf %12, %15 : vector<16x64xf32>
    %c0_17 = arith.constant 0 : index
    %c0_18 = arith.constant 0 : index
    %17 = vector.load %arg6[%c0_17, %c0_18] : memref<1x64xf32, #tpu.memory_space<vmem>>, vector<1x64xf32>
    %18 = vector.broadcast %17 : vector<1x64xf32> to vector<16x64xf32>
    %19 = arith.addf %16, %18 : vector<16x64xf32>
    %cst_19 = arith.constant 0.000000e+00 : f32
    %20 = vector.broadcast %cst_19 : f32 to vector<16x64xf32>
    %21 = arith.cmpf oge, %19, %20 : vector<16x64xf32>
    %cst_20 = arith.constant 2.000000e-01 : f32
    %22 = vector.broadcast %cst_20 : f32 to vector<16x64xf32>
    %23 = arith.mulf %19, %22 : vector<16x64xf32>
    %24 = arith.select %21, %19, %23 : vector<16x64xi1>, vector<16x64xf32>
    %c0_21 = arith.constant 0 : index
    %c0_22 = arith.constant 0 : index
    %25 = vector.load %arg7[%c0_21, %c0_22] : memref<16x64xbf16, #tpu.memory_space<vmem>>, vector<16x64xbf16>
    %26 = arith.truncf %24 : vector<16x64xf32> to vector<16x64xbf16>
    %cst_23 = arith.constant dense<0.000000e+00> : vector<16x16xf32>
    %27 = tpu.matmul %25, %26, %cst_23 {dimension_numbers = #tpu.dot_dimension_numbers<[1], [1], [0], [0], [0, 0, 1, 0], [], []>} : vector<16x64xbf16>, vector<16x64xbf16>, vector<16x16xf32> -> vector<16x16xf32>
    %c0_24 = arith.constant 0 : index
    %c0_25 = arith.constant 0 : index
    %28 = vector.load %arg8[%c0_24, %c0_25] : memref<16x1xf32, #tpu.memory_space<vmem>>, vector<16x1xf32>
    %29 = vector.broadcast %28 : vector<16x1xf32> to vector<16x16xf32>
    %30 = arith.addf %27, %29 : vector<16x16xf32>
    %c0_26 = arith.constant 0 : index
    %c0_27 = arith.constant 0 : index
    %c0_28 = arith.constant 0 : index
    %31 = vector.load %arg9[%c0_26, %c0_27, %c0_28] : memref<1x16x16xf32, #tpu.memory_space<vmem>>, vector<1x16x16xf32>
    %32 = vector.shape_cast %31 : vector<1x16x16xf32> to vector<16x16xf32>
    %33 = vector.shape_cast %30 : vector<16x16xf32> to vector<1x16x16xf32>
    tpu.vector_store %arg9[%c0_26, %c0_27, %c0_28], %33 {strides = array<i32>} : memref<1x16x16xf32, #tpu.memory_space<vmem>>, vector<1x16x16xf32>,
    return
  }
  func.func @transform_0(%arg0: i32) -> (i32, i32, i32) {
    %c0_i32 = arith.constant 0 : i32
    %c0_i32_0 = arith.constant 0 : i32
    %c0_i32_1 = arith.constant 0 : i32
    return %arg0, %c0_i32, %c0_i32_0 : i32, i32, i32
  }
  func.func @transform_1(%arg0: i32) -> (i32, i32, i32, i32) {
    %c0_i32 = arith.constant 0 : i32
    %c0_i32_0 = arith.constant 0 : i32
    %c0_i32_1 = arith.constant 0 : i32
    %c0_i32_2 = arith.constant 0 : i32
    return %c0_i32, %arg0, %c0_i32_0, %c0_i32_1 : i32, i32, i32, i32
  }
  func.func @transform_2(%arg0: i32) -> (i32, i32) {
    %c0_i32 = arith.constant 0 : i32
    %c0_i32_0 = arith.constant 0 : i32
    %c0_i32_1 = arith.constant 0 : i32
    return %c0_i32, %c0_i32_0 : i32, i32
  }
  func.func @transform_3(%arg0: i32) -> (i32, i32) {
    %c0_i32 = arith.constant 0 : i32
    %c0_i32_0 = arith.constant 0 : i32
    %c0_i32_1 = arith.constant 0 : i32
    return %c0_i32, %c0_i32_0 : i32, i32
  }
  func.func @transform_4(%arg0: i32) -> (i32, i32) {
    %c0_i32 = arith.constant 0 : i32
    %c0_i32_0 = arith.constant 0 : i32
    %c0_i32_1 = arith.constant 0 : i32
    return %c0_i32, %c0_i32_0 : i32, i32
  }
  func.func @transform_5(%arg0: i32) -> (i32, i32) {
    %c0_i32 = arith.constant 0 : i32
    %c0_i32_0 = arith.constant 0 : i32
    %c0_i32_1 = arith.constant 0 : i32
    return %c0_i32, %c0_i32_0 : i32, i32
  }
  func.func @transform_6(%arg0: i32) -> (i32, i32) {
    %c0_i32 = arith.constant 0 : i32
    %c0_i32_0 = arith.constant 0 : i32
    %c0_i32_1 = arith.constant 0 : i32
    return %c0_i32, %c0_i32_0 : i32, i32
  }
  func.func @transform_7(%arg0: i32) -> (i32, i32) {
    %c0_i32 = arith.constant 0 : i32
    %c0_i32_0 = arith.constant 0 : i32
    %c0_i32_1 = arith.constant 0 : i32
    return %c0_i32, %c0_i32_0 : i32, i32
  }
  func.func @transform_8(%arg0: i32) -> (i32, i32, i32) {
    %c0_i32 = arith.constant 0 : i32
    %c0_i32_0 = arith.constant 0 : i32
    %c0_i32_1 = arith.constant 0 : i32
    return %arg0, %c0_i32, %c0_i32_0 : i32, i32, i32
  }
}

</mosaic_0001>

<bundles_post_ra>
// kernel: decoder_forward.12
= control target key start
LH: loop header
LB: loop body
LE: loop exit
PB: predicated region body
PF: predicated region fallthrough
CT: control target
= control target key end

     0   :  { %s689_s21 = smov 0   ;;  %s760_s0 = inlined_call_operand.vmem [shape: f32[2,16,64], index: 0, kind: input, shape index: {}]   ;;  %s761_s1 = inlined_call_operand.vmem [shape: f32[2,16,64], index: 1, kind: input, shape index: {}]   ;;  %s762_s2 = inlined_call_operand.vmem [shape: bf16[64,64], index: 2, kind: input, shape index: {}]   ;;  %s763_s3 = inlined_call_operand.vmem [shape: f32[1,64], index: 3, kind: input, shape index: {}]   ;;  %s764_s4 = inlined_call_operand.vmem [shape: bf16[64,64], index: 4, kind: input, shape index: {}]   ;;  %s765_s5 = inlined_call_operand.vmem [shape: f32[1,64], index: 5, kind: input, shape index: {}]   ;;  %s766_s6 = inlined_call_operand.vmem [shape: f32[2,16,64], index: 6, kind: output, shape index: {}]  }
   0x1 LB: > { %s562_s22 = sadd.s32 4294967295, %s650_s21   ;;  %p566_p0 = scmp.ge.s32.totalorder %s650_s21, 1  ;;  %s650_s21 = sphi %s689_s21, %s16_s21  }
   0x2   : > { %p222_p1 = scmp.lt.s32.totalorder %s650_s21, 3 }
   0x4   : > { %p223_p2 = pnand %p566_p0, %p222_p1 }
   0x5   : > { %v634_v0 = vld [vmem:[%s762_s2] sm:$0xff] (!%p223_p2)   ;;  %v652_v1 = vmov (!%p223_p2), 0.0   ;;  %v635_v2 = vld [vmem:[%s762_s2 + $0x8] sm:$0xff] (!%p223_p2)   ;;  %vm653_vm0 = vmmov (!%p223_p2), 0   ;;  %p257_p3 = scmp.lt.s32.totalorder (!%p223_p2), %s562_s22, 1  ;;  %v636_v4 = vld [vmem:[%s762_s2 + $0x10] sm:$0xff] (!%p223_p2)  }
   0x6   : > { %226 = sbr.rel (%p223_p2) target bundleno = 520 (0x208), region = 44  ;;  %600 = vmatprep.subr.bf16.mxu0 (!%p223_p2), %v652_v1  ;;  %612 = vmatprep.subr.bf16.mxu1 (!%p223_p2), %v652_v1  ;;  %v638_v3 = vld [vmem:[%s764_s4] sm:$0xff] (!%p223_p2)   ;;  %v637_v10 = vld [vmem:[%s762_s2 + $0x18] sm:$0xff] (!%p223_p2)   ;;  %vm319_vm1 = vcmask (!%p223_p2), 523264   ;;  %v639_v13 = vld [vmem:[%s764_s4 + $0x8] sm:$0xff] (!%p223_p2)  }
   0x7   : > { %601 = vmatpush3.bf16.msra.mxu0 (!%p223_p2), %v634_v0  ;;  %608 = vmatprep.mubr.msk.bf16.mxu0 (!%p223_p2), %vm653_vm0, %v652_v1  ;;  %v640_v14 = vld [vmem:[%s764_s4 + $0x10] sm:$0xff] (!%p223_p2)   ;;  %v641_v15 = vld [vmem:[%s764_s4 + $0x18] sm:$0xff] (!%p223_p2)   ;;  %v573_v16 = vld [vmem:[%s763_s3] ss:$0 sm:$0xff] (!%p223_p2) }
   0x8   : > { %602 = vmatprep.subr.bf16.mxu0 (!%p223_p2), %v652_v1  ;;  %620 = vmatprep.mubr.msk.bf16.mxu1 (!%p223_p2), %vm653_vm0, %v652_v1  ;;  %v579_v30 = vld [vmem:[%s765_s5] ss:$0 sm:$0xff] (!%p223_p2) }
   0x9   : > { %613 = vmatpush3.bf16.msra.mxu1 (!%p223_p2), %v638_v3 }
   0xa   : > { %614 = vmatprep.subr.bf16.mxu1 (!%p223_p2), %v652_v1 }
   0xb   : > { %603 = vmatpush3.bf16.msra.mxu0 (!%p223_p2), %v635_v2 }
   0xc   : > { %604 = vmatprep.subr.bf16.mxu0 (!%p223_p2), %v652_v1 }
   0xd   : > { %s768_s22 = smov (!%p257_p3, %s562_s22), 1  ;;  %615 = vmatpush3.bf16.msra.mxu1 %v639_v13 }
   0xe   : > { %s709_s7 = sshll.u32 %s768_s22, 4  ;;  %616 = vmatprep.subr.bf16.mxu1 %v652_v1 }
   0xf   : > { %s261_s10 = scalar_lea.vmem %s760_s0, %s709_s7  ;;  %s266_s13 = scalar_lea.vmem %s761_s1, %s709_s7  ;;  %605 = vmatpush3.bf16.msra.mxu0 %v636_v4 }
  0x10   : > { %v719_v5 = vld [vmem:[%s261_s10] sm:$0xff]  ;;  %v721_v6 = vld [vmem:[%s261_s10 + $0x8] sm:$0xff]  ;;  %606 = vmatprep.subr.bf16.mxu0 %v652_v1  ;;  %s271_s29 = scalar_lea.vmem %s766_s6, %s709_s7 }
  0x11   : > { %v275_v7 = vld [vmem:[%s266_s13] sm:$0xff]  ;;  %v276_v8 = vld [vmem:[%s266_s13 + $0x8] sm:$0xff]  ;;  %617 = vmatpush3.bf16.msra.mxu1 %v640_v14 }
  0x12   : > { %v277_v9 = vadd.f32 %v275_v7, %v719_v5  ;;  %v278_v11 = vadd.f32 %v276_v8, %v721_v6  ;;  %618 = vmatprep.subr.bf16.mxu1 %v652_v1 }
  0x13   : > { %607 = vmatpush3.bf16.msra.mxu0 %v637_v10 }
  0x14   : > { %v279_v12 = vpack.c.bf16 %v278_v11, %v277_v9 }
  0x15   : > { %619 = vmatpush3.bf16.msra.mxu1 %v641_v15 }
  0x16   : > { %609 = vmatmul.mubr.msk.bf16.vlgmr.msra.gmra.mrb[0].mxu0 %vm319_vm1, %v279_v12 }
  0xe9   : > { %v357_v17 = vpop.f32.mrb[0].mxu0 }
  0xea   : > { %v358_v18 = vadd.f32 %v573_v16, %v357_v17  ;;  %v610_v19 = vpop.f32.mrb[1].mxu0 }
  0xeb   : > { %v360_v20 = vpop.f32.mrb[2].mxu0 }
  0xec   : > { %vm364_vm2 = vcmp.ge.f32.partialorder %v358_v18, 0.0  ;;  %v366_v21 = vmul.f32 0.2, %v358_v18  ;;  %v361_v22 = vadd.f32 %v573_v16, %v360_v20  ;;  %v611_v23 = vpop.f32.mrb[3].mxu0 }
  0xee   : > { %v368_v24 = vsel %vm364_vm2, %v358_v18, %v366_v21  ;;  %vm365_vm3 = vcmp.ge.f32.partialorder %v361_v22, 0.0  ;;  %v367_v25 = vmul.f32 0.2, %v361_v22 }
  0xef   : > { %v370_v27 = vadd.f32 %v368_v24, %v275_v7 }
  0xf0   : > { %v369_v26 = vsel %vm365_vm3, %v361_v22, %v367_v25 }
  0xf1   : > { %v371_v28 = vadd.f32 %v369_v26, %v276_v8 }
  0xf3   : > { %v372_v29 = vpack.c.bf16 %v371_v28, %v370_v27 }
  0xf5   : > { %621 = vmatmul.mubr.msk.bf16.vlgmr.msra.gmra.mrb[0].mxu1 %vm319_vm1, %v372_v29 }
 0x1c8   : > { %v449_v31 = vpop.f32.mrb[0].mxu1 }
 0x1c9   : > { %v450_v32 = vadd.f32 %v579_v30, %v449_v31  ;;  %v622_v33 = vpop.f32.mrb[1].mxu1 }
 0x1ca   : > { %v452_v34 = vpop.f32.mrb[2].mxu1 }
 0x1cb   : > { %vm456_vm4 = vcmp.ge.f32.partialorder %v450_v32, 0.0  ;;  %v458_v35 = vmul.f32 0.2, %v450_v32  ;;  %v453_v36 = vadd.f32 %v579_v30, %v452_v34  ;;  %v623_v37 = vpop.f32.mrb[3].mxu1 }
 0x1cd   : > { %v460_v38 = vsel %vm456_vm4, %v450_v32, %v458_v35  ;;  %vm457_vm5 = vcmp.ge.f32.partialorder %v453_v36, 0.0  ;;  %v459_v39 = vmul.f32 0.2, %v453_v36 }
 0x1ce   : > { %v462_v41 = vsel %vm319_vm1, %v460_v38, 0.0 }
 0x1cf   : > { %v461_v40 = vsel %vm457_vm5, %v453_v36, %v459_v39 }
 0x1d0   : > { %v463_v42 = vsel %vm319_vm1, %v461_v40, 0.0 }
 0x1d1   : > { %v464_v43 = vadd.f32 %v463_v42, %v462_v41 }
 0x1d3   : > { %v465_v44 = vrot.slane %v464_v43, 4 }
 0x1d5   : > { %v466_v45 = vadd.f32 %v465_v44, %v464_v43 }
 0x1d7   : > { %v467_v46 = vrot.slane %v466_v45, 2 }
 0x1d9   : > { %v468_v47 = vadd.f32 %v467_v46, %v466_v45 }
 0x1db   : > { %v469_v48 = vrot.slane %v468_v47, 1 }
 0x1dd   : > { %v470_v49 = vadd.f32 %v469_v48, %v468_v47 }
 0x1df   : > { %v472_v50 = vmul.f32 0.0625, %v470_v49 }
 0x1e1   : > { %v473_v51 = vsub.f32 %v460_v38, %v472_v50  ;;  %v474_v52 = vsub.f32 %v461_v40, %v472_v50 }
 0x1e3   : > { %v475_v53 = vmul.f32 %v473_v51, %v473_v51  ;;  %v476_v54 = vmul.f32 %v474_v52, %v474_v52 }
 0x1e5   : > { %v477_v55 = vsel %vm319_vm1, %v475_v53, 0.0  ;;  %v478_v56 = vsel %vm319_vm1, %v476_v54, 0.0 }
 0x1e6   : > { %v479_v57 = vadd.f32 %v478_v56, %v477_v55 }
 0x1e8   : > { %v480_v58 = vrot.slane %v479_v57, 4 }
 0x1ea   : > { %v481_v59 = vadd.f32 %v480_v58, %v479_v57 }
 0x1ec   : > { %v482_v60 = vrot.slane %v481_v59, 2 }
 0x1ee   : > { %v483_v61 = vadd.f32 %v482_v60, %v481_v59 }
 0x1f0   : > { %v484_v62 = vrot.slane %v483_v61, 1 }
 0x1f2   : > { %v485_v63 = vadd.f32 %v484_v62, %v483_v61 }
 0x1f4   : > { %v486_v0 = vmul.f32 0.0625, %v485_v63 }
 0x1f6   : > { %v487_v1 = vadd.f32 1e-05, %v486_v0 }
 0x1f8   : > { %642 = vrsqrt.f32 %v487_v1 }
 0x202   : > { %v643_v2 = vpop.eup %642 }
 0x203   : > { %v489_v3 = vmul.f32 %v643_v2, %v473_v51  ;;  %v490_v4 = vmul.f32 %v643_v2, %v474_v52 }
 0x205   : > { %v491_v7 = vadd.f32 %v489_v3, %v719_v5  ;;  %v492_v8 = vadd.f32 %v490_v4, %v721_v6 }
 0x207   : > { %493 = vst.msk [vmem:[%s271_s29] sm:$0xff] %vm319_vm1, %v491_v7  ;;  %494 = vst.msk [vmem:[%s271_s29 + $0x8] sm:$0xff] %vm319_vm1, %v492_v8 }
 0x208 PF: > { %s16_s21 = sadd.s32 1, %s650_s21  }
 0x209   : > { %p13_p4 = scmp.ge.s32.totalorder %s16_s21, 4  }
 0x20b   :  { %15 = sbr.rel (!%p13_p4) target bundleno = 1 (0x1), region = 77 }

// kernel: decoder_forward.14
= control target key start
LH: loop header
LB: loop body
LE: loop exit
PB: predicated region body
PF: predicated region fallthrough
CT: control target
= control target key end

     0   :  { %s1003_s18 = smov 0   ;;  %s1005_s19 = smov 0   ;;  %s1121_s0 = inlined_call_operand.vmem [shape: f32[2,16,64], index: 0, kind: input, shape index: {}]   ;;  %s1122_s1 = inlined_call_operand.vmem [shape: f32[2,16,64], index: 1, kind: input, shape index: {}]   ;;  %s1123_s2 = inlined_call_operand.vmem [shape: bf16[2,64,128], index: 2, kind: input, shape index: {}]   ;;  %s1124_s3 = inlined_call_operand.vmem [shape: bf16[2,32,128], index: 3, kind: input, shape index: {}]   ;;  %s1125_s4 = inlined_call_operand.vmem [shape: f32[2,1,128], index: 4, kind: input, shape index: {}]   ;;  %s1126_s5 = inlined_call_operand.vmem [shape: f32[2,2,16,32], index: 5, kind: output, shape index: {}]  }
   0x1   :  { %1127 = sst [smem:[#allocation4_spill]] %s1123_s2  ;;  %s1007_s20 = smov 0  }
   0x2   :  { %s1009_s21 = smov 0   ;;  %s1011_s22 = smov 0  }
   0x3 LB: > { %s24_s23 = sadd.s32 1, %s957_s20  ;;  %s27_s24 = sadd.s32 1, %s961_s21  ;;  %s965_s22 = sphi %s1011_s22, %s15_s22   ;;  %s961_s21 = sphi %s1009_s21, %s1132_s21   ;;  %s957_s20 = sphi %s1007_s20, %s1131_s20   ;;  %s953_s19 = sphi %s1005_s19, %s1130_s19   ;;  %s949_s18 = sphi %s1003_s18, %s1129_s18  }
   0x4   : > { %p25_p0 = scmp.ge.s32.totalorder %s24_s23, 2  ;;  %p798_p1 = scmp.ge.s32.totalorder %s965_s22, 1 }
   0x5   : > { %p279_p2 = scmp.lt.s32.totalorder %s965_s22, 5 }
   0x6   : > { %s1134_s23 = smov (%p25_p0, %s24_s23), 0  ;;  %s1136_s24 = smov (!%p25_p0, %s27_s24), %s961_s21 }
   0x7   : > { %p280_p3 = pnand %p798_p1, %p279_p2  ;;  %p29_p4 = scmp.ge.s32.totalorder %s1136_s24, 2 }
   0x8   : > { %s799_s25 = sshll.u32 (!%p280_p3), %s949_s18, 1  ;;  %p367_p5 = scmp.lt.s32.totalorder (!%p280_p3), %s953_s19, 1 }
   0x9   : > { %s1138_s24 = smov (%p29_p4, %s1136_s24), 0  ;;  %283 = sbr.rel (%p280_p3) target bundleno = 755 (0x2f3), region = 40 }
   0xa   : > { %s342_s26 = ssub.s32 (!%p280_p3), 1, %s799_s25  ;;  %s1128_s2 = sld [smem:[#allocation4_spill]] (!%p280_p3) }
   0xb   : > { %s343_s27 = smul.u32 (!%p280_p3), %s953_s19, %s342_s26  ;;  %p813_p7 = scmp.ne.s32.totalorder (!%p280_p3), %s949_s18, 0 }
   0xd   : > { %s344_s28 = sadd.s32 (!%p280_p3), %s949_s18, %s343_s27 }
   0xe   : > { %p345_p6 = scmp.lt.s32.totalorder (!%p280_p3), %s344_s28, 1 }
  0x10   : > { %s1140_s19 = smov (!%p367_p5, %s953_s19), 1  ;;  %s1142_s28 = smov (!%p345_p6, %s344_s28), 1 }
  0x11   : > { %s829_s29 = sshll.u32 %s1140_s19, 5  ;;  %s830_s8 = sshll.u32 %s1140_s19, 4  ;;  %vm402_vm0 = vcmask (!%p813_p7), 261120   ;;  %v967_v0 = vmov (!%p813_p7), 0.0  }
  0x12   : > { %s1043_s7 = scalar_lea.vmem %s1128_s2, %s829_s29  ;;  %s1049_s11 = scalar_lea.vmem %s1124_s3, %s830_s8  ;;  %403 = vst.msk [vmem:[#allocation2] sm:$0xff] (!%p813_p7), %vm402_vm0, %v967_v0  ;;  %404 = vst.msk [vmem:[#allocation2 + $0x8] sm:$0xff] (!%p813_p7), %vm402_vm0, %v967_v0 }
  0x13   : > { %s379_s14 = scalar_lea.vmem %s1125_s4, %s1140_s19  ;;  %s827_s15 = sshll.u32 %s1142_s28, 4  ;;  %405 = vst.msk [vmem:[#allocation3] sm:$0xff] (!%p813_p7), %vm402_vm0, %v967_v0  ;;  %406 = vst.msk [vmem:[#allocation3 + $0x8] sm:$0xff] (!%p813_p7), %vm402_vm0, %v967_v0 }
  0x14   : > { %s810_s16 = sshll.u32 %s1142_s28, 1  ;;  %s1058_s26 = scalar_lea.vmem %s1121_s0, %s827_s15 }
  0x15   : > { %s1063_s30 = scalar_lea.vmem %s1122_s1, %s827_s15  ;;  %s811_s6 = sshll.u32 %s1140_s19, 2 }
  0x16   : > { %s390_s9 = sadd.s32 %s811_s6, %s810_s16  ;;  %401 = sbr.rel (%p813_p7) target bundleno = 29 (0x1d), region = 44 }
  0x17   : > { %s812_s8 = sshll.u32 %s390_s9, 3 }
  0x18   : > { %s1069_s12 = scalar_lea.vmem %s1126_s5, %s812_s8 }
  0x1d PF: > { %v905_v1 = vld [vmem:[%s1043_s7] sm:$0xff]   ;;  %v968_v2 = vmov 0.0   ;;  %v906_v3 = vld [vmem:[%s1043_s7 + $0x8] sm:$0xff]   ;;  %vm969_vm1 = vmmov 0   ;;  %v908_v8 = vld [vmem:[%s1043_s7 + $0x10] sm:$0xff]   ;;  %vm441_vm2 = vcmask 261120  }
  0x1e   : > { %847 = vmatprep.subr.bf16.mxu1 %v968_v2  ;;  %839 = vmatprep.subr.bf16.mxu0 %v968_v2  ;;  %v907_v4 = vld [vmem:[%s1049_s11] sm:$0xff]   ;;  %v909_v5 = vld [vmem:[%s1049_s11 + $0x8] sm:$0xff]   ;;  %v578_v14 = vld [vmem:[#allocation3] sm:$0xff]  ;;  %s970_s2 = smov 32   ;;  %vm510_vm3 = vcmask 523264   ;;  %s972_s19 = smov 96  }
  0x1f   : > { %848 = vmatpush3.bf16.msra.mxu1 %v905_v1  ;;  %843 = vmatprep.mubr.msk.bf16.mxu0 %vm969_vm1, %v968_v2  ;;  %v422_v6 = vld [vmem:[#allocation2] sm:$0xff]  ;;  %v423_v7 = vld [vmem:[#allocation2 + $0x8] sm:$0xff]  ;;  %v910_v17 = vld [vmem:[%s1043_s7 + $0x18] sm:$0xff]   ;;  %s971_s7 = smov 64  }
  0x20   : > { %849 = vmatprep.subr.bf16.mxu1 %v968_v2  ;;  %855 = vmatprep.mubr.msk.bf16.mxu1 %vm969_vm1, %v968_v2  ;;  %v407_v9 = vld [vmem:[%s1058_s26] sm:$0xff]  ;;  %v424_v10 = vpack.c.bf16 %v423_v7, %v422_v6  ;;  %v408_v11 = vld [vmem:[%s1058_s26 + $0x8] sm:$0xff]  ;;  %v579_v18 = vld [vmem:[#allocation3 + $0x8] sm:$0xff] }
  0x21   : > { %840 = vmatpush3.bf16.msra.mxu0 %v907_v4  ;;  %v409_v12 = vld [vmem:[%s1063_s30] sm:$0xff]  ;;  %v410_v13 = vld [vmem:[%s1063_s30 + $0x8] sm:$0xff]  ;;  %582 = vrot.lane.b32.xlu1 %v578_v14, %s970_s2 }
  0x22   : > { %841 = vmatprep.subr.bf16.mxu0 %v968_v2  ;;  %v411_v15 = vadd.f32 %v409_v12, %v407_v9  ;;  %v412_v16 = vadd.f32 %v410_v13, %v408_v11  ;;  %v822_v25 = vld [vmem:[%s379_s14] ss:$0 sm:$0xff] }
  0x23   : > { %850 = vmatpush3.bf16.msra.mxu1 %v906_v3 }
  0x24   : > { %851 = vmatprep.subr.bf16.mxu1 %v968_v2  ;;  %v413_v19 = vpack.c.bf16 %v412_v16, %v411_v15 }
  0x25   : > { %842 = vmatpush3.bf16.msra.mxu0 %v909_v5  ;;  %584 = vrot.lane.b32.xlu1 %v579_v18, %s970_s2 }
  0x27   : > { %852 = vmatpush3.bf16.msra.mxu1 %v908_v8 }
  0x28   : > { %853 = vmatprep.subr.bf16.mxu1 %v968_v2  ;;  %844 = vmatmul.mubr.msk.bf16.vlgmr.msra.gmra.mrb[0].mxu0 %vm441_vm2, %v424_v10 }
  0x2b   : > { %854 = vmatpush3.bf16.msra.mxu1 %v910_v17 }
  0x2e   : > { %856 = vmatmul.mubr.msk.bf16.vlgmr.msra.gmra.mrb[0].mxu1 %vm510_vm3, %v413_v19 }
  0x93   : > { %v583_v47 = vpop.permute.xlu1 %582 }
  0x97   : > { %v585_v49 = vpop.permute.xlu1 %584 }
  0xfb   : > { %v479_v20 = vpop.f32.mrb[0].mxu0 }
  0xfc   : > { %v845_v21 = vpop.f32.mrb[1].mxu0 }
  0xfd   : > { %v482_v22 = vpop.f32.mrb[2].mxu0 }
  0xfe   : > { %v846_v23 = vpop.f32.mrb[3].mxu0 }
 0x101   : > { %v548_v24 = vpop.f32.mrb[0].mxu1 }
 0x102   : > { %v549_v26 = vadd.f32 %v548_v24, %v479_v20  ;;  %v857_v27 = vpop.f32.mrb[1].mxu1 }
 0x103   : > { %v551_v28 = vpop.f32.mrb[2].mxu1 }
 0x104   : > { %v562_v29 = vadd.f32 %v822_v25, %v549_v26  ;;  %v552_v30 = vadd.f32 %v551_v28, %v482_v22  ;;  %v858_v31 = vpop.f32.mrb[3].mxu1 }
 0x106   : > { %911 = vtanh.f32 %v562_v29  ;;  %v563_v32 = vadd.f32 %v822_v25, %v552_v30  ;;  %v823_v35 = vmul.f32 -1.442695, %v562_v29 }
 0x108   : > { %913 = vtanh.f32 %v563_v32  ;;  %v824_v36 = vmul.f32 -1.442695, %v563_v32 }
 0x109   : > { %915 = vpow2.f32 %v823_v35 }
 0x10a   : > { %917 = vpow2.f32 %v824_v36 }
 0x110   : > { %v912_v33 = vpop.eup %911 }
 0x111   : > { %592 = vrot.lane.b32.xlu0 %v912_v33, %s971_s7 }
 0x112   : > { %v914_v34 = vpop.eup %913 }
 0x113   : > { %v916_v37 = vpop.eup %915 }
 0x114   : > { %v570_v38 = vadd.f32 1.0, %v916_v37  ;;  %v918_v39 = vpop.eup %917 }
 0x115   : > { %594 = vrot.lane.b32.xlu0 %v914_v34, %s971_s7  ;;  %v571_v40 = vadd.f32 1.0, %v918_v39 }
 0x116   : > { %919 = vrcp.f32 %v570_v38 }
 0x117   : > { %921 = vrcp.f32 %v571_v40 }
 0x120   : > { %v920_v41 = vpop.eup %919 }
 0x121   : > { %v922_v44 = vpop.eup %921  ;;  %v588_v48 = vmul.f32 %v920_v41, %v583_v47 }
 0x122   : > { %v589_v52 = vmul.f32 %v922_v44, %v585_v49 }
 0x183   : > { %v593_v42 = vpop.permute.xlu0 %592 }
 0x184   : > { %v598_v43 = vmul.f32 %v920_v41, %v593_v42 }
 0x186   : > { %602 = vrot.lane.b32.xlu0 %v598_v43, %s970_s2 }
 0x187   : > { %v595_v45 = vpop.permute.xlu0 %594 }
 0x188   : > { %v599_v46 = vmul.f32 %v922_v44, %v595_v45 }
 0x18a   : > { %604 = vrot.lane.b32.xlu1 %v599_v46, %s970_s2 }
 0x1f8   : > { %v603_v50 = vpop.permute.xlu0 %602 }
 0x1f9   : > { %v608_v51 = vadd.f32 %v603_v50, %v588_v48 }
 0x1fb   : > { %923 = vtanh.f32 %v608_v51 }
 0x1fc   : > { %v605_v53 = vpop.permute.xlu1 %604 }
 0x1fd   : > { %v609_v54 = vadd.f32 %v605_v53, %v589_v52 }
 0x1ff   : > { %925 = vtanh.f32 %v609_v54 }
 0x205   : > { %v924_v55 = vpop.eup %923 }
 0x206   : > { %614 = vrot.lane.b32.xlu0 %v924_v55, %s971_s7 }
 0x209   : > { %v926_v56 = vpop.eup %925 }
 0x20a   : > { %624 = vrot.lane.b32.xlu0 %v608_v51, %s972_s19  ;;  %616 = vrot.lane.b32.xlu1 %v926_v56, %s971_s7 }
 0x20e   : > { %626 = vrot.lane.b32.xlu1 %v609_v54, %s972_s19 }
 0x278   : > { %v615_v57 = vpop.permute.xlu0 %614 }
 0x279   : > { %v620_v58 = vmul.f32 %v920_v41, %v615_v57 }
 0x27b   : > { %634 = vrot.lane.b32.xlu0 %v620_v58, %s970_s2 }
 0x27c   : > { %v625_v59 = vpop.permute.xlu0 %624  ;;  %v617_v60 = vpop.permute.xlu1 %616 }
 0x27d   : > { %630 = vst.msk [vmem:[#allocation3] sm:$0xff] %vm441_vm2, %v625_v59  ;;  %v621_v61 = vmul.f32 %v922_v44, %v617_v60 }
 0x27f   : > { %636 = vrot.lane.b32.xlu1 %v621_v61, %s970_s2 }
 0x280   : > { %v627_v62 = vpop.permute.xlu1 %626 }
 0x281   : > { %631 = vst.msk [vmem:[#allocation3 + $0x8] sm:$0xff] %vm441_vm2, %v627_v62 }
 0x2ed   : > { %v635_v63 = vpop.permute.xlu0 %634 }
 0x2ee   : > { %640 = vst.msk [vmem:[#allocation2] sm:$0xff] %vm441_vm2, %v635_v63  ;;  %642 = vst.msk [vmem:[%s1069_s12] sm:$0xff] %vm441_vm2, %v635_v63 }
 0x2f1   : > { %v637_v0 = vpop.permute.xlu1 %636 }
 0x2f2   : > { %641 = vst.msk [vmem:[#allocation2 + $0x8] sm:$0xff] %vm441_vm2, %v637_v0  ;;  %643 = vst.msk [vmem:[%s1069_s12 + $0x8] sm:$0xff] %vm441_vm2, %v637_v0 }
 0x2f3 PF: > { %s15_s22 = sadd.s32 1, %s965_s22   ;;  %s1129_s18 = smov %s957_s20 }
 0x2f4   : > { %p12_p8 = scmp.ge.s32.totalorder %s15_s22, 6   ;;  %s1130_s19 = smov %s961_s21 }
 0x2f5   : > { %s1131_s20 = smov %s1134_s23  ;;  %s1132_s21 = smov %s1138_s24 }
 0x2f6   :  { %14 = sbr.rel (!%p12_p8) target bundleno = 3 (0x3), region = 86 }

// kernel: decoder_forward.8
= control target key start
LH: loop header
LB: loop body
LE: loop exit
PB: predicated region body
PF: predicated region fallthrough
CT: control target
= control target key end

     0   :  { %s1418_s12 = smov 0   ;;  %s1588_s0 = inlined_call_operand.vmem [shape: f32[2,16,16], index: 0, kind: input, shape index: {}]   ;;  %s1589_s1 = inlined_call_operand.vmem [shape: bf16[15,16,64], index: 1, kind: input, shape index: {}]   ;;  %s1590_s2 = inlined_call_operand.vmem [shape: f32[1,64], index: 2, kind: input, shape index: {}]   ;;  %s1591_s3 = inlined_call_operand.vmem [shape: f32[2,16,64], index: 3, kind: output, shape index: {}]  }
   0x1 LB: > { %s1167_s13 = sadd.s32 4294967295, %s1392_s12   ;;  %p1171_p0 = scmp.ge.s32.totalorder %s1392_s12, 1  ;;  %s1392_s12 = sphi %s1418_s12, %s13_s12  }
   0x2   : > { %p137_p1 = scmp.lt.s32.totalorder %s1392_s12, 3 }
   0x4   : > { %p138_p2 = pnand %p1171_p0, %p137_p1 }
   0x5   : > { %v1371_v0 = vld [vmem:[%s1589_s1 + $0x8] sm:$0xff] (!%p138_p2)   ;;  %v1394_v1 = vmov (!%p138_p2), 0.0   ;;  %v1372_v2 = vld [vmem:[%s1589_s1] sm:$0xff] (!%p138_p2)   ;;  %vm1395_vm0 = vmmov (!%p138_p2), 0   ;;  %p161_p3 = scmp.lt.s32.totalorder (!%p138_p2), %s1167_s13, 1  ;;  %vm176_vm1 = vcmask (!%p138_p2), 1046528  }
   0x6   : > { %141 = sbr.rel (%p138_p2) target bundleno = 304 (0x130), region = 32  ;;  %1269 = vmatprep.subr.bf16.mxu0 (!%p138_p2), %v1394_v1  ;;  %1275 = vmatprep.subr.bf16.mxu1 (!%p138_p2), %v1394_v1  ;;  %vm211_vm2 = vcmask (!%p138_p2), 130048   ;;  %v1374_v7 = vld [vmem:[%s1589_s1 + $0x18] sm:$0xff] (!%p138_p2)   ;;  %vm192_vm3 = vsmask.f32 (!%p138_p2), 7424  ;;  %v1373_v24 = vld [vmem:[%s1589_s1 + $0x10] sm:$0xff] (!%p138_p2)  }
   0x7   : > { %1270 = vmatpush3.bf16.msra.mxu0 (!%p138_p2), %v1371_v0  ;;  %1271 = vmatprep.mubr.msk.bf16.mxu0 (!%p138_p2), %vm1395_vm0, %v1394_v1  ;;  %vm369_vm4 = vsmask.f32 (!%p138_p2), 6400  ;;  %v1376_v29 = vld [vmem:[%s1589_s1 + $0x28] sm:$0xff] (!%p138_p2)   ;;  %vm493_vm5 = vsmask.f32 (!%p138_p2), 5376  ;;  %v1375_v39 = vld [vmem:[%s1589_s1 + $0x20] sm:$0xff] (!%p138_p2)  }
   0x8   : > { %1276 = vmatpush3.bf16.msra.mxu1 (!%p138_p2), %v1372_v2  ;;  %1277 = vmatprep.mubr.msk.bf16.mxu1 (!%p138_p2), %vm1395_vm0, %v1394_v1  ;;  %v1378_v43 = vld [vmem:[%s1589_s1 + $0x38] sm:$0xff] (!%p138_p2)   ;;  %vm434_vm6 = vcmask (!%p138_p2), 1045504   ;;  %vm615_vm7 = vsmask.f32 (!%p138_p2), 4352  ;;  %v1377_v53 = vld [vmem:[%s1589_s1 + $0x30] sm:$0xff] (!%p138_p2)   ;;  %v1380_v55 = vld [vmem:[%s1589_s1 + $0x48] sm:$0xff] (!%p138_p2)  }
   0x9   : > { %1281 = vmatprep.subr.bf16.mxu0 (!%p138_p2), %v1394_v1  ;;  %1287 = vmatprep.subr.bf16.mxu1 (!%p138_p2), %v1394_v1  ;;  %vm556_vm8 = vcmask (!%p138_p2), 1044480   ;;  %v1396_v61 = vmov (!%p138_p2), 0   ;;  %v1379_v0 = vld [vmem:[%s1589_s1 + $0x40] sm:$0xff] (!%p138_p2)   ;;  %vm1109_vm9 = vcmask (!%p138_p2), 523264  }
   0xa   : > { %v744_v62 = vrot.slane (!%p138_p2), %v1396_v61, 1 }
   0xd   : > { %s1593_s13 = smov (!%p161_p3, %s1167_s13), 1 }
   0xe   : > { %s1237_s18 = sshll.u32 %s1593_s13, 4 }
   0xf   : > { %s165_s21 = scalar_lea.vmem %s1588_s0, %s1237_s18  ;;  %s170_s28 = scalar_lea.vmem %s1591_s3, %s1237_s18 }
  0x10   : > { %v172_v3 = vld [vmem:[%s165_s21] sm:$0xff]  ;;  %v173_v4 = vld [vmem:[%s165_s21 + $0x8] sm:$0xff] }
  0x11   : > { %v177_v5 = vrot.slane %v172_v3, 1  ;;  %v178_v6 = vrot.slane %v173_v4, 1  ;;  %v1382_v3 = vld [vmem:[%s1589_s1 + $0x58] sm:$0xff]  }
  0x13   : > { %v179_v8 = vsel %vm176_vm1, %v177_v5, %v178_v6  ;;  %v183_v9 = vsel %vm176_vm1, 0.0, %v177_v5  ;;  %v184_v10 = vsel %vm176_vm1, %v178_v6, 0.0  ;;  %v867_v6 = vrot.slane %v1396_v61, 2 }
  0x14   : > { %v1454_v11 = vpack.c.bf16 %v179_v8, %v183_v9  ;;  %v1456_v12 = vpack.c.bf16 %v184_v10, %v184_v10  ;;  %v1489_v41 = vpack.c.bf16 %v184_v10, %v179_v8  ;;  %v1381_v9 = vld [vmem:[%s1589_s1 + $0x50] sm:$0xff]  }
  0x15   : > { %v868_v8 = vor.u32 %v867_v6, %v744_v62 }
  0x16   : > { %v194_v13 = vshrl.u32 %v1454_v11, 16  ;;  %v196_v14 = vshll.u32 %v1454_v11, 16  ;;  %v201_v15 = vshll.u32 %v1456_v12, 16  ;;  %1278 = vmatmul.mubr.msk.bf16.vlgmr.msra.gmra.mrb[0].mxu1 %vm211_vm2, %v1454_v11  ;;  %v373_v16 = vshrl.u32 %v1456_v12, 16 }
  0x17   : > { %1288 = vmatpush3.bf16.msra.mxu1 %v1374_v7  ;;  %1289 = vmatprep.mubr.msk.bf16.mxu1 %vm1395_vm0, %v1394_v1  ;;  %v311_v34 = vrot.slane %v1454_v11, 1  ;;  %v312_v35 = vrot.slane %v1456_v12, 1  ;;  %v435_v47 = vrot.slane %v1454_v11, 2  ;;  %v436_v48 = vrot.slane %v1456_v12, 2 }
  0x18   : > { %v198_v17 = vrot.slane %v196_v14, 1  ;;  %v203_v18 = vrot.slane %v201_v15, 1  ;;  %v370_v19 = vrot.slane %v194_v13, 1  ;;  %v371_v20 = vrot.slane %v196_v14, 2  ;;  %1299 = vmatprep.subr.bf16.mxu1 %v1394_v1 }
  0x19   : > { %v375_v21 = vrot.slane %v373_v16, 1  ;;  %v376_v22 = vrot.slane %v201_v15, 2  ;;  %v494_v27 = vrot.slane %v194_v13, 2  ;;  %v495_v30 = vrot.slane %v196_v14, 3 }
  0x1a   : > { %v199_v23 = vor.u32 %v198_v17, %v194_v13  ;;  %v372_v25 = vor.u32 %v371_v20, %v370_v19  ;;  %v497_v31 = vrot.slane %v373_v16, 2  ;;  %v498_v32 = vrot.slane %v201_v15, 3 }
  0x1b   : > { %v377_v26 = vor.u32 %v376_v22, %v375_v21  ;;  %v496_v36 = vor.u32 %v495_v30, %v494_v27  ;;  %v313_v38 = vsel %vm176_vm1, %v311_v34, %v312_v35  ;;  %v616_v40 = vrot.slane %v194_v13, 3  ;;  %v1383_v21 = vld [vmem:[%s1589_s1 + $0x60] sm:$0xff]  }
  0x1c   : > { %v204_v28 = vsel %vm192_vm3, %v199_v23, %v203_v18  ;;  %v499_v37 = vor.u32 %v498_v32, %v497_v31  ;;  %v617_v44 = vrot.slane %v196_v14, 4  ;;  %v619_v45 = vrot.slane %v373_v16, 3 }
  0x1d   : > { %1272 = vmatmul.mubr.msk.bf16.vlgmr.msra.gmra.mrb[0].mxu0 %vm211_vm2, %v204_v28  ;;  %v378_v33 = vsel %vm369_vm4, %v372_v25, %v377_v26  ;;  %v620_v46 = vrot.slane %v201_v15, 4  ;;  %v737_v51 = vshll.u32 %v1489_v41, 16  ;;  %v437_v52 = vsel %vm434_vm6, %v435_v47, %v436_v48  ;;  %v1385_v26 = vld [vmem:[%s1589_s1 + $0x70] sm:$0xff]  }
  0x1e   : > { %1282 = vmatpush3.bf16.msra.mxu0 %v1373_v24  ;;  %1283 = vmatprep.mubr.msk.bf16.mxu0 %vm1395_vm0, %v1394_v1  ;;  %v500_v42 = vsel %vm493_vm5, %v496_v36, %v499_v37  ;;  %v618_v49 = vor.u32 %v617_v44, %v616_v40  ;;  %v735_v56 = vshrl.u32 %v1489_v41, 16  ;;  %v557_v58 = vrot.slane %v1454_v11, 3  ;;  %v1384_v11 = vld [vmem:[%s1589_s1 + $0x68] sm:$0xff]  }
  0x1f   : > { %1293 = vmatprep.subr.bf16.mxu0 %v1394_v1  ;;  %1290 = vmatmul.mubr.msk.bf16.vlgmr.msra.gmra.mrb[4].mxu1 %vm211_vm2, %v378_v33  ;;  %v621_v50 = vor.u32 %v620_v46, %v619_v45  ;;  %v739_v57 = vrot.slane %v737_v51, 1  ;;  %v558_v59 = vrot.slane %v1456_v12, 3  ;;  %v862_v5 = vrot.slane %v737_v51, 2 }
  0x20   : > { %1300 = vmatpush3.bf16.msra.mxu1 %v1376_v29  ;;  %1301 = vmatprep.mubr.msk.bf16.mxu1 %vm1395_vm0, %v1394_v1  ;;  %v861_v4 = vrot.slane %v735_v56, 1  ;;  %v983_v12 = vrot.slane %v735_v56, 2  ;;  %v984_v13 = vrot.slane %v737_v51, 3  ;;  %v987_v14 = vrot.slane %v1396_v61, 3 }
  0x21   : > { %1311 = vmatprep.subr.bf16.mxu1 %v1394_v1  ;;  %v622_v54 = vsel %vm615_vm7, %v618_v49, %v621_v50  ;;  %v740_v60 = vor.u32 %v739_v57, %v735_v56  ;;  %v559_v63 = vsel %vm556_vm8, %v557_v58, %v558_v59  ;;  %v803_v15 = vrot.slane %v1489_v41, 1 }
  0x22   : > { %v863_v7 = vor.u32 %v862_v5, %v861_v4  ;;  %v1397_v16 = vmov 0.0|0.0   ;;  %v985_v18 = vor.u32 %v984_v13, %v983_v12  ;;  %v988_v19 = vor.u32 %v987_v14, %v867_v6 }
  0x23   : > { %v745_v2 = vsel %vm192_vm3, %v740_v60, %v744_v62  ;;  %v804_v17 = vrot.slane %v1397_v16, 1  ;;  %v925_v23 = vrot.slane %v1489_v41, 2  ;;  %v926_v24 = vrot.slane %v1397_v16, 2 }
  0x24   : > { %v869_v10 = vsel %vm369_vm4, %v863_v7, %v868_v8  ;;  %v989_v22 = vsel %vm493_vm5, %v985_v18, %v988_v19  ;;  %v1045_v27 = vrot.slane %v1489_v41, 3  ;;  %v1046_v28 = vrot.slane %v1397_v16, 3 }
  0x25   : > { %1284 = vmatmul.mubr.msk.bf16.vlgmr.msra.gmra.mrb[4].mxu0 %vm211_vm2, %v313_v38  ;;  %v805_v20 = vsel %vm176_vm1, %v803_v15, %v804_v17  ;;  %v927_v25 = vsel %vm434_vm6, %v925_v23, %v926_v24 }
  0x26   : > { %1294 = vmatpush3.bf16.msra.mxu0 %v1375_v39  ;;  %1295 = vmatprep.mubr.msk.bf16.mxu0 %vm1395_vm0, %v1394_v1  ;;  %v1047_v29 = vsel %vm556_vm8, %v1045_v27, %v1046_v28 }
  0x27   : > { %1305 = vmatprep.subr.bf16.mxu0 %v1394_v1  ;;  %1302 = vmatmul.mubr.msk.bf16.vlgmr.msra.gmra.mrb[8].mxu1 %vm211_vm2, %v500_v42 }
  0x28   : > { %1312 = vmatpush3.bf16.msra.mxu1 %v1378_v43  ;;  %1313 = vmatprep.mubr.msk.bf16.mxu1 %vm1395_vm0, %v1394_v1 }
  0x29   : > { %1323 = vmatprep.subr.bf16.mxu1 %v1394_v1 }
  0x2d   : > { %1296 = vmatmul.mubr.msk.bf16.vlgmr.msra.gmra.mrb[8].mxu0 %vm211_vm2, %v437_v52 }
  0x2e   : > { %1306 = vmatpush3.bf16.msra.mxu0 %v1377_v53  ;;  %1307 = vmatprep.mubr.msk.bf16.mxu0 %vm1395_vm0, %v1394_v1 }
  0x2f   : > { %1317 = vmatprep.subr.bf16.mxu0 %v1394_v1  ;;  %1314 = vmatmul.mubr.msk.bf16.vlgmr.msra.gmra.mrb[12].mxu1 %vm211_vm2, %v622_v54 }
  0x30   : > { %1324 = vmatpush3.bf16.msra.mxu1 %v1380_v55  ;;  %1325 = vmatprep.mubr.msk.bf16.mxu1 %vm1395_vm0, %v1394_v1 }
  0x31   : > { %1335 = vmatprep.subr.bf16.mxu1 %v1394_v1 }
  0x35   : > { %1308 = vmatmul.mubr.msk.bf16.vlgmr.msra.gmra.mrb[12].mxu0 %vm211_vm2, %v559_v63 }
  0x36   : > { %1318 = vmatpush3.bf16.msra.mxu0 %v1379_v0  ;;  %1319 = vmatprep.mubr.msk.bf16.mxu0 %vm1395_vm0, %v1394_v1 }
  0x37   : > { %1329 = vmatprep.subr.bf16.mxu0 %v1394_v1  ;;  %1326 = vmatmul.mubr.msk.bf16.vlgmr.msra.gmra.mrb[16].mxu1 %vm211_vm2, %v745_v2 }
  0x38   : > { %1336 = vmatpush3.bf16.msra.mxu1 %v1382_v3  ;;  %1337 = vmatprep.mubr.msk.bf16.mxu1 %vm1395_vm0, %v1394_v1 }
  0x39   : > { %1347 = vmatprep.subr.bf16.mxu1 %v1394_v1 }
  0x3d   : > { %1320 = vmatmul.mubr.msk.bf16.vlgmr.msra.gmra.mrb[16].mxu0 %vm211_vm2, %v1489_v41 }
  0x3e   : > { %1330 = vmatpush3.bf16.msra.mxu0 %v1381_v9  ;;  %1331 = vmatprep.mubr.msk.bf16.mxu0 %vm1395_vm0, %v1394_v1 }
  0x3f   : > { %1341 = vmatprep.subr.bf16.mxu0 %v1394_v1  ;;  %1338 = vmatmul.mubr.msk.bf16.vlgmr.msra.gmra.mrb[20].mxu1 %vm211_vm2, %v869_v10 }
  0x40   : > { %1348 = vmatpush3.bf16.msra.mxu1 %v1384_v11  ;;  %1349 = vmatprep.mubr.msk.bf16.mxu1 %vm1395_vm0, %v1394_v1 }
  0x45   : > { %1332 = vmatmul.mubr.msk.bf16.vlgmr.msra.gmra.mrb[20].mxu0 %vm211_vm2, %v805_v20 }
  0x46   : > { %1342 = vmatpush3.bf16.msra.mxu0 %v1383_v21  ;;  %1343 = vmatprep.mubr.msk.bf16.mxu0 %vm1395_vm0, %v1394_v1 }
  0x47   : > { %1353 = vmatprep.subr.bf16.mxu0 %v1394_v1  ;;  %1350 = vmatmul.mubr.msk.bf16.vlgmr.msra.gmra.mrb[24].mxu1 %vm211_vm2, %v989_v22 }
  0x4d   : > { %1344 = vmatmul.mubr.msk.bf16.vlgmr.msra.gmra.mrb[24].mxu0 %vm211_vm2, %v927_v25 }
  0x4e   : > { %1354 = vmatpush3.bf16.msra.mxu0 %v1385_v26  ;;  %1355 = vmatprep.mubr.msk.bf16.mxu0 %vm1395_vm0, %v1394_v1 }
  0x55   : > { %1356 = vmatmul.mubr.msk.bf16.vlgmr.msra.gmra.mrb[28].mxu0 %vm211_vm2, %v1047_v29 }
  0xe9   : > { %v298_v30 = vpop.f32.mrb[0].mxu1 }
  0xea   : > { %v1279_v31 = vpop.f32.mrb[1].mxu1 }
  0xeb   : > { %v301_v32 = vpop.f32.mrb[2].mxu1 }
  0xec   : > { %v1280_v33 = vpop.f32.mrb[3].mxu1 }
  0xf0   : > { %v249_v34 = vpop.f32.mrb[0].mxu0 }
  0xf1   : > { %v299_v35 = vadd.f32 %v298_v30, %v249_v34  ;;  %v1273_v36 = vpop.f32.mrb[1].mxu0 }
  0xf2   : > { %v252_v37 = vpop.f32.mrb[2].mxu0  ;;  %v422_v38 = vpop.f32.mrb[4].mxu1 }
  0xf3   : > { %v302_v39 = vadd.f32 %v301_v32, %v252_v37  ;;  %v1274_v40 = vpop.f32.mrb[3].mxu0  ;;  %v1291_v42 = vpop.f32.mrb[5].mxu1 }
  0xf4   : > { %v425_v1 = vpop.f32.mrb[6].mxu1 }
  0xf5   : > { %v1292_v43 = vpop.f32.mrb[7].mxu1 }
  0xf8   : > { %v357_v41 = vpop.f32.mrb[4].mxu0 }
  0xf9   : > { %v364_v44 = vadd.f32 %v357_v41, %v299_v35  ;;  %v1285_v45 = vpop.f32.mrb[5].mxu0 }
  0xfa   : > { %v360_v46 = vpop.f32.mrb[6].mxu0  ;;  %v544_v47 = vpop.f32.mrb[8].mxu1 }
  0xfb   : > { %v365_v48 = vadd.f32 %v360_v46, %v302_v39  ;;  %v429_v49 = vadd.f32 %v422_v38, %v364_v44  ;;  %v1286_v50 = vpop.f32.mrb[7].mxu0  ;;  %v1303_v51 = vpop.f32.mrb[9].mxu1 }
  0xfc   : > { %v547_v52 = vpop.f32.mrb[10].mxu1 }
  0xfd   : > { %v430_v53 = vadd.f32 %v425_v1, %v365_v48  ;;  %v1304_v54 = vpop.f32.mrb[11].mxu1  ;;  %v1234_v48 = vld [vmem:[%s1590_s2] ss:$0 sm:$0xff] }
 0x100   : > { %v481_v55 = vpop.f32.mrb[8].mxu0 }
 0x101   : > { %v488_v56 = vadd.f32 %v481_v55, %v429_v49  ;;  %v1297_v57 = vpop.f32.mrb[9].mxu0 }
 0x102   : > { %v484_v58 = vpop.f32.mrb[10].mxu0  ;;  %v666_v59 = vpop.f32.mrb[12].mxu1 }
 0x103   : > { %v489_v60 = vadd.f32 %v484_v58, %v430_v53  ;;  %v551_v61 = vadd.f32 %v544_v47, %v488_v56  ;;  %v1298_v62 = vpop.f32.mrb[11].mxu0  ;;  %v1315_v63 = vpop.f32.mrb[13].mxu1 }
 0x104   : > { %v669_v0 = vpop.f32.mrb[14].mxu1 }
 0x105   : > { %v552_v2 = vadd.f32 %v547_v52, %v489_v60  ;;  %v1316_v3 = vpop.f32.mrb[15].mxu1 }
 0x108   : > { %v603_v4 = vpop.f32.mrb[12].mxu0 }
 0x109   : > { %v610_v5 = vadd.f32 %v603_v4, %v551_v61  ;;  %v1309_v6 = vpop.f32.mrb[13].mxu0 }
 0x10a   : > { %v606_v7 = vpop.f32.mrb[14].mxu0  ;;  %v789_v8 = vpop.f32.mrb[16].mxu1 }
 0x10b   : > { %v611_v9 = vadd.f32 %v606_v7, %v552_v2  ;;  %v673_v10 = vadd.f32 %v666_v59, %v610_v5  ;;  %v1310_v11 = vpop.f32.mrb[15].mxu0  ;;  %v1327_v12 = vpop.f32.mrb[17].mxu1 }
 0x10c   : > { %v792_v13 = vpop.f32.mrb[18].mxu1 }
 0x10d   : > { %v674_v14 = vadd.f32 %v669_v0, %v611_v9  ;;  %v1328_v15 = vpop.f32.mrb[19].mxu1 }
 0x110   : > { %v722_v16 = vpop.f32.mrb[16].mxu0 }
 0x111   : > { %v729_v17 = vadd.f32 %v722_v16, %v673_v10  ;;  %v1321_v18 = vpop.f32.mrb[17].mxu0 }
 0x112   : > { %v725_v19 = vpop.f32.mrb[18].mxu0  ;;  %v913_v20 = vpop.f32.mrb[20].mxu1 }
 0x113   : > { %v730_v21 = vadd.f32 %v725_v19, %v674_v14  ;;  %v796_v22 = vadd.f32 %v789_v8, %v729_v17  ;;  %v1322_v23 = vpop.f32.mrb[19].mxu0  ;;  %v1339_v24 = vpop.f32.mrb[21].mxu1 }
 0x114   : > { %v916_v25 = vpop.f32.mrb[22].mxu1 }
 0x115   : > { %v797_v26 = vadd.f32 %v792_v13, %v730_v21  ;;  %v1340_v27 = vpop.f32.mrb[23].mxu1 }
 0x118   : > { %v849_v28 = vpop.f32.mrb[20].mxu0 }
 0x119   : > { %v856_v29 = vadd.f32 %v849_v28, %v796_v22  ;;  %v1333_v30 = vpop.f32.mrb[21].mxu0 }
 0x11a   : > { %v852_v31 = vpop.f32.mrb[22].mxu0  ;;  %v1033_v32 = vpop.f32.mrb[24].mxu1 }
 0x11b   : > { %v857_v33 = vadd.f32 %v852_v31, %v797_v26  ;;  %v920_v34 = vadd.f32 %v913_v20, %v856_v29  ;;  %v1334_v35 = vpop.f32.mrb[23].mxu0  ;;  %v1351_v36 = vpop.f32.mrb[25].mxu1 }
 0x11c   : > { %v1036_v37 = vpop.f32.mrb[26].mxu1 }
 0x11d   : > { %v921_v38 = vadd.f32 %v916_v25, %v857_v33  ;;  %v1352_v39 = vpop.f32.mrb[27].mxu1 }
 0x120   : > { %v971_v40 = vpop.f32.mrb[24].mxu0 }
 0x121   : > { %v978_v42 = vadd.f32 %v971_v40, %v920_v34  ;;  %v1345_v1 = vpop.f32.mrb[25].mxu0 }
 0x122   : > { %v974_v43 = vpop.f32.mrb[26].mxu0 }
 0x123   : > { %v979_v41 = vadd.f32 %v974_v43, %v921_v38  ;;  %v1040_v44 = vadd.f32 %v1033_v32, %v978_v42  ;;  %v1346_v45 = vpop.f32.mrb[27].mxu0 }
 0x125   : > { %v1041_v46 = vadd.f32 %v1036_v37, %v979_v41 }
 0x128   : > { %v1091_v47 = vpop.f32.mrb[28].mxu0 }
 0x129   : > { %v1098_v49 = vadd.f32 %v1091_v47, %v1040_v44  ;;  %v1357_v50 = vpop.f32.mrb[29].mxu0 }
 0x12a   : > { %v1094_v51 = vpop.f32.mrb[30].mxu0 }
 0x12b   : > { %v1107_v52 = vadd.f32 %v1234_v48, %v1098_v49  ;;  %v1099_v53 = vadd.f32 %v1094_v51, %v1041_v46  ;;  %v1358_v54 = vpop.f32.mrb[31].mxu0 }
 0x12d   : > { %1110 = vst.msk [vmem:[%s170_s28] sm:$0xff] %vm1109_vm9, %v1107_v52  ;;  %v1108_v55 = vadd.f32 %v1234_v48, %v1099_v53 }
 0x12f   : > { %1111 = vst.msk [vmem:[%s170_s28 + $0x8] sm:$0xff] %vm1109_vm9, %v1108_v55 }
 0x130 PF: > { %s13_s12 = sadd.s32 1, %s1392_s12  }
 0x131   : > { %p10_p4 = scmp.ge.s32.totalorder %s13_s12, 4  }
 0x133   :  { %12 = sbr.rel (!%p10_p4) target bundleno = 1 (0x1), region = 76 }

// kernel: decoder_forward.9
= control target key start
LH: loop header
LB: loop body
LE: loop exit
PB: predicated region body
PF: predicated region fallthrough
CT: control target
= control target key end

     0   :  { %s1206_s21 = smov 0   ;;  %s1383_s0 = inlined_call_operand.vmem [shape: f32[2,16,64], index: 0, kind: input, shape index: {}]   ;;  %s1384_s1 = inlined_call_operand.vmem [shape: f32[2,16,64], index: 1, kind: input, shape index: {}]   ;;  %s1385_s2 = inlined_call_operand.vmem [shape: bf16[3,64,64], index: 2, kind: input, shape index: {}]   ;;  %s1386_s3 = inlined_call_operand.vmem [shape: f32[1,64], index: 3, kind: input, shape index: {}]   ;;  %s1387_s4 = inlined_call_operand.vmem [shape: bf16[3,64,64], index: 4, kind: input, shape index: {}]   ;;  %s1388_s5 = inlined_call_operand.vmem [shape: f32[1,64], index: 5, kind: input, shape index: {}]   ;;  %s1389_s6 = inlined_call_operand.vmem [shape: f32[2,16,64], index: 6, kind: output, shape index: {}]  }
   0x1 LB: > { %s943_s22 = sadd.s32 4294967295, %s1167_s21   ;;  %p947_p0 = scmp.ge.s32.totalorder %s1167_s21, 1  ;;  %s1167_s21 = sphi %s1206_s21, %s16_s21  }
   0x2   : > { %p222_p1 = scmp.lt.s32.totalorder %s1167_s21, 3 }
   0x4   : > { %p223_p2 = pnand %p947_p0, %p222_p1 }
   0x5   : > { %v1135_v0 = vld [vmem:[%s1385_s2 + $0x20] sm:$0xff] (!%p223_p2)   ;;  %v1169_v1 = vmov (!%p223_p2), 0.0   ;;  %v1137_v3 = vld [vmem:[%s1385_s2 + $0x28] sm:$0xff] (!%p223_p2)   ;;  %vm1170_vm0 = vmmov (!%p223_p2), 0   ;;  %p257_p3 = scmp.lt.s32.totalorder (!%p223_p2), %s943_s22, 1  ;;  %v1139_v5 = vld [vmem:[%s1385_s2 + $0x30] sm:$0xff] (!%p223_p2)  }
   0x6   : > { %226 = sbr.rel (%p223_p2) target bundleno = 576 (0x240), region = 44  ;;  %1053 = vmatprep.subr.bf16.mxu0 (!%p223_p2), %v1169_v1  ;;  %1065 = vmatprep.subr.bf16.mxu1 (!%p223_p2), %v1169_v1  ;;  %v1136_v2 = vld [vmem:[%s1385_s2] sm:$0xff] (!%p223_p2)   ;;  %v1138_v4 = vld [vmem:[%s1385_s2 + $0x8] sm:$0xff] (!%p223_p2)   ;;  %v1140_v6 = vld [vmem:[%s1385_s2 + $0x10] sm:$0xff] (!%p223_p2)   ;;  %vm283_vm1 = vcmask (!%p223_p2), 1040384   ;;  %vm351_vm2 = vcmask (!%p223_p2), 523264  }
   0x7   : > { %1054 = vmatpush3.bf16.msra.mxu0 (!%p223_p2), %v1135_v0  ;;  %1061 = vmatprep.mubr.msk.bf16.mxu0 (!%p223_p2), %vm1170_vm0, %v1169_v1  ;;  %v1141_v12 = vld [vmem:[%s1385_s2 + $0x38] sm:$0xff] (!%p223_p2)   ;;  %vm314_vm3 = vsmask.f32 (!%p223_p2), 7424  ;;  %v1143_v29 = vld [vmem:[%s1385_s2 + $0x40] sm:$0xff] (!%p223_p2)   ;;  %v1144_v32 = vld [vmem:[%s1385_s2 + $0x48] sm:$0xff] (!%p223_p2)   ;;  %vm474_vm4 = vcmask (!%p223_p2), 1046528  }
   0x8   : > { %1066 = vmatpush3.bf16.msra.mxu1 (!%p223_p2), %v1136_v2  ;;  %1055 = vmatprep.subr.bf16.mxu0 (!%p223_p2), %v1169_v1  ;;  %v1142_v14 = vld [vmem:[%s1385_s2 + $0x18] sm:$0xff] (!%p223_p2)   ;;  %v1145_v33 = vld [vmem:[%s1385_s2 + $0x50] sm:$0xff] (!%p223_p2)   ;;  %v1147_v38 = vld [vmem:[%s1387_s4] sm:$0xff] (!%p223_p2)  }
   0x9   : > { %1067 = vmatprep.subr.bf16.mxu1 (!%p223_p2), %v1169_v1  ;;  %1073 = vmatprep.mubr.msk.bf16.mxu1 (!%p223_p2), %vm1170_vm0, %v1169_v1  ;;  %v1146_v34 = vld [vmem:[%s1385_s2 + $0x58] sm:$0xff] (!%p223_p2)   ;;  %v1148_v39 = vld [vmem:[%s1387_s4 + $0x8] sm:$0xff] (!%p223_p2)   ;;  %v1149_v40 = vld [vmem:[%s1387_s4 + $0x20] sm:$0xff] (!%p223_p2)  }
   0xa   : > { %v1150_v41 = vld [vmem:[%s1387_s4 + $0x10] sm:$0xff] (!%p223_p2)   ;;  %v1151_v42 = vld [vmem:[%s1387_s4 + $0x28] sm:$0xff] (!%p223_p2)   ;;  %v1152_v43 = vld [vmem:[%s1387_s4 + $0x18] sm:$0xff] (!%p223_p2)  }
   0xb   : > { %1056 = vmatpush3.bf16.msra.mxu0 (!%p223_p2), %v1137_v3  ;;  %v1153_v44 = vld [vmem:[%s1387_s4 + $0x30] sm:$0xff] (!%p223_p2)   ;;  %v1154_v45 = vld [vmem:[%s1387_s4 + $0x38] sm:$0xff] (!%p223_p2)   ;;  %v985_v56 = vld [vmem:[%s1386_s3] ss:$0 sm:$0xff] (!%p223_p2) }
   0xc   : > { %1068 = vmatpush3.bf16.msra.mxu1 (!%p223_p2), %v1138_v4  ;;  %1057 = vmatprep.subr.bf16.mxu0 (!%p223_p2), %v1169_v1 }
   0xd   : > { %s1391_s22 = smov (!%p257_p3, %s943_s22), 1  ;;  %1069 = vmatprep.subr.bf16.mxu1 %v1169_v1 }
   0xe   : > { %s1237_s9 = sshll.u32 %s1391_s22, 4 }
   0xf   : > { %s261_s14 = scalar_lea.vmem %s1383_s0, %s1237_s9  ;;  %s266_s17 = scalar_lea.vmem %s1384_s1, %s1237_s9  ;;  %1058 = vmatpush3.bf16.msra.mxu0 %v1139_v5 }
  0x10   : > { %v1252_v7 = vld [vmem:[%s261_s14] sm:$0xff]  ;;  %v1254_v8 = vld [vmem:[%s261_s14 + $0x8] sm:$0xff]  ;;  %1070 = vmatpush3.bf16.msra.mxu1 %v1140_v6  ;;  %1059 = vmatprep.subr.bf16.mxu0 %v1169_v1  ;;  %s271_s16 = scalar_lea.vmem %s1389_s6, %s1237_s9 }
  0x11   : > { %v1256_v9 = vld [vmem:[%s266_s17] sm:$0xff]  ;;  %v1258_v10 = vld [vmem:[%s266_s17 + $0x8] sm:$0xff]  ;;  %1071 = vmatprep.subr.bf16.mxu1 %v1169_v1 }
  0x12   : > { %v277_v11 = vadd.f32 %v1256_v9, %v1252_v7  ;;  %v278_v13 = vadd.f32 %v1258_v10, %v1254_v8 }
  0x13   : > { %1060 = vmatpush3.bf16.msra.mxu0 %v1141_v12 }
  0x14   : > { %v280_v15 = vrot.slane %v277_v11, 1  ;;  %v284_v16 = vrot.slane %v277_v11, 7  ;;  %v285_v17 = vrot.slane %v278_v13, 7  ;;  %v290_v18 = vrot.slane %v278_v13, 5  ;;  %1072 = vmatpush3.bf16.msra.mxu1 %v1142_v14  ;;  %1077 = vmatprep.subr.bf16.mxu0 %v1169_v1 }
  0x15   : > { %1089 = vmatprep.subr.bf16.mxu1 %v1169_v1 }
  0x16   : > { %v292_v19 = vsel %vm283_vm1, %v280_v15, %v284_v16  ;;  %v286_v20 = vsel %vm283_vm1, %v284_v16, %v285_v17  ;;  %v293_v21 = vsel %vm283_vm1, %v285_v17, %v290_v18 }
  0x17   : > { %v295_v22 = vpack.c.bf16 %v286_v20, %v292_v19  ;;  %v304_v23 = vpack.c.bf16 %v293_v21, %v293_v21 }
  0x19   : > { %v316_v24 = vshrl.u32 %v295_v22, 16  ;;  %v318_v25 = vshll.u32 %v295_v22, 16  ;;  %v323_v26 = vshll.u32 %v304_v23, 16  ;;  %1074 = vmatmul.mubr.msk.bf16.vlgmr.msra.gmra.mrb[0].mxu1 %vm351_vm2, %v295_v22  ;;  %v475_v35 = vrot.slane %v295_v22, 1 }
  0x1a   : > { %1097 = vmatprep.mubr.msk.bf16.mxu1 %vm1170_vm0, %v1169_v1  ;;  %v476_v36 = vrot.slane %v304_v23, 1  ;;  %1090 = vmatpush3.bf16.msra.mxu1 %v1149_v40 }
  0x1b   : > { %v320_v27 = vrot.slane %v318_v25, 1  ;;  %v325_v28 = vrot.slane %v323_v26, 1  ;;  %1091 = vmatprep.subr.bf16.mxu1 %v1169_v1 }
  0x1c   : > { %v477_v37 = vsel %vm474_vm4, %v475_v35, %v476_v36 }
  0x1d   : > { %v321_v30 = vor.u32 %v320_v27, %v316_v24 }
  0x1e   : > { %1092 = vmatpush3.bf16.msra.mxu1 %v1151_v42 }
  0x1f   : > { %v326_v31 = vsel %vm314_vm3, %v321_v30, %v325_v28  ;;  %1093 = vmatprep.subr.bf16.mxu1 %v1169_v1  ;;  %v1155_v28 = vld [vmem:[%s1387_s4 + $0x40] sm:$0xff]   ;;  %v1156_v30 = vld [vmem:[%s1387_s4 + $0x48] sm:$0xff]  }
  0x20   : > { %1062 = vmatmul.mubr.msk.bf16.vlgmr.msra.gmra.mrb[0].mxu0 %vm351_vm2, %v326_v31  ;;  %v1157_v31 = vld [vmem:[%s1387_s4 + $0x50] sm:$0xff]  }
  0x21   : > { %1078 = vmatpush3.bf16.msra.mxu0 %v1143_v29  ;;  %1085 = vmatprep.mubr.msk.bf16.mxu0 %vm1170_vm0, %v1169_v1 }
  0x22   : > { %1079 = vmatprep.subr.bf16.mxu0 %v1169_v1  ;;  %1094 = vmatpush3.bf16.msra.mxu1 %v1153_v44 }
  0x23   : > { %1095 = vmatprep.subr.bf16.mxu1 %v1169_v1 }
  0x25   : > { %1080 = vmatpush3.bf16.msra.mxu0 %v1144_v32  ;;  %v1158_v32 = vld [vmem:[%s1387_s4 + $0x58] sm:$0xff]  }
  0x26   : > { %1081 = vmatprep.subr.bf16.mxu0 %v1169_v1  ;;  %1096 = vmatpush3.bf16.msra.mxu1 %v1154_v45 }
  0x27   : > { %1113 = vmatprep.subr.bf16.mxu1 %v1169_v1 }
  0x29   : > { %1082 = vmatpush3.bf16.msra.mxu0 %v1145_v33 }
  0x2a   : > { %1083 = vmatprep.subr.bf16.mxu0 %v1169_v1 }
  0x2d   : > { %1084 = vmatpush3.bf16.msra.mxu0 %v1146_v34 }
  0x2e   : > { %1101 = vmatprep.subr.bf16.mxu0 %v1169_v1 }
  0x30   : > { %1086 = vmatmul.mubr.msk.bf16.vlgmr.msra.gmra.mrb[4].mxu0 %vm351_vm2, %v477_v37 }
  0x31   : > { %1109 = vmatprep.mubr.msk.bf16.mxu0 %vm1170_vm0, %v1169_v1  ;;  %1102 = vmatpush3.bf16.msra.mxu0 %v1147_v38 }
  0x32   : > { %1103 = vmatprep.subr.bf16.mxu0 %v1169_v1 }
  0x35   : > { %1104 = vmatpush3.bf16.msra.mxu0 %v1148_v39 }
  0x36   : > { %1105 = vmatprep.subr.bf16.mxu0 %v1169_v1 }
  0x39   : > { %1106 = vmatpush3.bf16.msra.mxu0 %v1150_v41 }
  0x3a   : > { %1107 = vmatprep.subr.bf16.mxu0 %v1169_v1 }
  0x3d   : > { %1108 = vmatpush3.bf16.msra.mxu0 %v1152_v43  ;;  %v1017_v43 = vld [vmem:[%s1388_s5] ss:$0 sm:$0xff] }
  0xec   : > { %v456_v46 = vpop.f32.mrb[0].mxu1 }
  0xed   : > { %v1075_v47 = vpop.f32.mrb[1].mxu1 }
  0xee   : > { %v459_v48 = vpop.f32.mrb[2].mxu1 }
  0xef   : > { %v1076_v49 = vpop.f32.mrb[3].mxu1 }
  0xf3   : > { %v389_v50 = vpop.f32.mrb[0].mxu0 }
  0xf4   : > { %v457_v51 = vadd.f32 %v456_v46, %v389_v50  ;;  %v1063_v52 = vpop.f32.mrb[1].mxu0 }
  0xf5   : > { %v392_v53 = vpop.f32.mrb[2].mxu0 }
  0xf6   : > { %v460_v54 = vadd.f32 %v459_v48, %v392_v53  ;;  %v1064_v55 = vpop.f32.mrb[3].mxu0 }
 0x103   : > { %v539_v57 = vpop.f32.mrb[4].mxu0 }
 0x104   : > { %v546_v58 = vadd.f32 %v539_v57, %v457_v51  ;;  %v1087_v59 = vpop.f32.mrb[5].mxu0 }
 0x105   : > { %v542_v60 = vpop.f32.mrb[6].mxu0 }
 0x106   : > { %v554_v61 = vadd.f32 %v985_v56, %v546_v58  ;;  %v547_v62 = vadd.f32 %v542_v60, %v460_v54  ;;  %v1088_v63 = vpop.f32.mrb[7].mxu0 }
 0x108   : > { %vm556_vm5 = vcmp.ge.f32.partialorder %v554_v61, 0.0  ;;  %v558_v0 = vmul.f32 0.2, %v554_v61  ;;  %v555_v2 = vadd.f32 %v985_v56, %v547_v62 }
 0x10a   : > { %v560_v3 = vsel %vm556_vm5, %v554_v61, %v558_v0  ;;  %vm557_vm6 = vcmp.ge.f32.partialorder %v555_v2, 0.0  ;;  %v559_v4 = vmul.f32 0.2, %v555_v2 }
 0x10b   : > { %v562_v5 = vadd.f32 %v560_v3, %v1256_v9 }
 0x10c   : > { %v561_v6 = vsel %vm557_vm6, %v555_v2, %v559_v4 }
 0x10d   : > { %v565_v11 = vrot.slane %v562_v5, 1  ;;  %v568_v12 = vrot.slane %v562_v5, 7  ;;  %v563_v13 = vadd.f32 %v561_v6, %v1258_v10 }
 0x10f   : > { %v569_v14 = vrot.slane %v563_v13, 7  ;;  %v574_v15 = vrot.slane %v563_v13, 5  ;;  %v576_v17 = vsel %vm283_vm1, %v565_v11, %v568_v12 }
 0x111   : > { %v570_v16 = vsel %vm283_vm1, %v568_v12, %v569_v14  ;;  %v577_v18 = vsel %vm283_vm1, %v569_v14, %v574_v15 }
 0x112   : > { %v579_v19 = vpack.c.bf16 %v570_v16, %v576_v17  ;;  %v588_v20 = vpack.c.bf16 %v577_v18, %v577_v18 }
 0x114   : > { %1110 = vmatmul.mubr.msk.bf16.vlgmr.msra.gmra.mrb[8].mxu0 %vm351_vm2, %v579_v19  ;;  %v601_v21 = vshll.u32 %v579_v19, 16  ;;  %v606_v22 = vshll.u32 %v588_v20, 16  ;;  %v756_v9 = vrot.slane %v579_v19, 1  ;;  %v757_v23 = vrot.slane %v588_v20, 1 }
 0x115   : > { %v599_v24 = vshrl.u32 %v579_v19, 16 }
 0x116   : > { %v603_v25 = vrot.slane %v601_v21, 1  ;;  %v758_v10 = vsel %vm474_vm4, %v756_v9, %v757_v23  ;;  %v608_v27 = vrot.slane %v606_v22, 1 }
 0x118   : > { %v604_v26 = vor.u32 %v603_v25, %v599_v24 }
 0x11a   : > { %v609_v29 = vsel %vm314_vm3, %v604_v26, %v608_v27 }
 0x11b   : > { %1098 = vmatmul.mubr.msk.bf16.vlgmr.msra.gmra.mrb[4].mxu1 %vm351_vm2, %v609_v29 }
 0x11c   : > { %1114 = vmatpush3.bf16.msra.mxu1 %v1155_v28  ;;  %1121 = vmatprep.mubr.msk.bf16.mxu1 %vm1170_vm0, %v1169_v1 }
 0x11d   : > { %1115 = vmatprep.subr.bf16.mxu1 %v1169_v1 }
 0x120   : > { %1116 = vmatpush3.bf16.msra.mxu1 %v1156_v30 }
 0x121   : > { %1117 = vmatprep.subr.bf16.mxu1 %v1169_v1 }
 0x124   : > { %1118 = vmatpush3.bf16.msra.mxu1 %v1157_v31 }
 0x125   : > { %1119 = vmatprep.subr.bf16.mxu1 %v1169_v1 }
 0x128   : > { %1120 = vmatpush3.bf16.msra.mxu1 %v1158_v32 }
 0x12b   : > { %1122 = vmatmul.mubr.msk.bf16.vlgmr.msra.gmra.mrb[8].mxu1 %vm351_vm2, %v758_v10 }
 0x1e7   : > { %v738_v33 = vpop.f32.mrb[8].mxu0 }
 0x1e8   : > { %v1111_v34 = vpop.f32.mrb[9].mxu0 }
 0x1e9   : > { %v741_v35 = vpop.f32.mrb[10].mxu0 }
 0x1ea   : > { %v1112_v36 = vpop.f32.mrb[11].mxu0 }
 0x1ee   : > { %v671_v37 = vpop.f32.mrb[4].mxu1 }
 0x1ef   : > { %v739_v38 = vadd.f32 %v738_v33, %v671_v37  ;;  %v1099_v39 = vpop.f32.mrb[5].mxu1 }
 0x1f0   : > { %v674_v40 = vpop.f32.mrb[6].mxu1 }
 0x1f1   : > { %v742_v41 = vadd.f32 %v741_v35, %v674_v40  ;;  %v1100_v42 = vpop.f32.mrb[7].mxu1 }
 0x1fe   : > { %v820_v44 = vpop.f32.mrb[8].mxu1 }
 0x1ff   : > { %v827_v45 = vadd.f32 %v820_v44, %v739_v38  ;;  %v1123_v1 = vpop.f32.mrb[9].mxu1 }
 0x200   : > { %v823_v46 = vpop.f32.mrb[10].mxu1 }
 0x201   : > { %v835_v47 = vadd.f32 %v1017_v43, %v827_v45  ;;  %v828_v48 = vadd.f32 %v823_v46, %v742_v41  ;;  %v1124_v49 = vpop.f32.mrb[11].mxu1 }
 0x203   : > { %vm837_vm7 = vcmp.ge.f32.partialorder %v835_v47, 0.0  ;;  %v839_v50 = vmul.f32 0.2, %v835_v47  ;;  %v836_v51 = vadd.f32 %v1017_v43, %v828_v48 }
 0x205   : > { %v841_v52 = vsel %vm837_vm7, %v835_v47, %v839_v50  ;;  %vm838_vm8 = vcmp.ge.f32.partialorder %v836_v51, 0.0  ;;  %v840_v53 = vmul.f32 0.2, %v836_v51 }
 0x206   : > { %v843_v55 = vsel %vm351_vm2, %v841_v52, 0.0 }
 0x207   : > { %v842_v54 = vsel %vm838_vm8, %v836_v51, %v840_v53 }
 0x208   : > { %v844_v56 = vsel %vm351_vm2, %v842_v54, 0.0 }
 0x209   : > { %v845_v57 = vadd.f32 %v844_v56, %v843_v55 }
 0x20b   : > { %v846_v58 = vrot.slane %v845_v57, 4 }
 0x20d   : > { %v847_v59 = vadd.f32 %v846_v58, %v845_v57 }
 0x20f   : > { %v848_v60 = vrot.slane %v847_v59, 2 }
 0x211   : > { %v849_v61 = vadd.f32 %v848_v60, %v847_v59 }
 0x213   : > { %v850_v62 = vrot.slane %v849_v61, 1 }
 0x215   : > { %v851_v63 = vadd.f32 %v850_v62, %v849_v61 }
 0x217   : > { %v853_v0 = vmul.f32 0.0625, %v851_v63 }
 0x219   : > { %v854_v2 = vsub.f32 %v841_v52, %v853_v0  ;;  %v855_v3 = vsub.f32 %v842_v54, %v853_v0 }
 0x21b   : > { %v856_v4 = vmul.f32 %v854_v2, %v854_v2  ;;  %v857_v5 = vmul.f32 %v855_v3, %v855_v3 }
 0x21d   : > { %v858_v6 = vsel %vm351_vm2, %v856_v4, 0.0  ;;  %v859_v11 = vsel %vm351_vm2, %v857_v5, 0.0 }
 0x21e   : > { %v860_v12 = vadd.f32 %v859_v11, %v858_v6 }
 0x220   : > { %v861_v13 = vrot.slane %v860_v12, 4 }
 0x222   : > { %v862_v14 = vadd.f32 %v861_v13, %v860_v12 }
 0x224   : > { %v863_v15 = vrot.slane %v862_v14, 2 }
 0x226   : > { %v864_v16 = vadd.f32 %v863_v15, %v862_v14 }
 0x228   : > { %v865_v17 = vrot.slane %v864_v16, 1 }
 0x22a   : > { %v866_v18 = vadd.f32 %v865_v17, %v864_v16 }
 0x22c   : > { %v867_v19 = vmul.f32 0.0625, %v866_v18 }
 0x22e   : > { %v868_v20 = vadd.f32 1e-05, %v867_v19 }
 0x230   : > { %1159 = vrsqrt.f32 %v868_v20 }
 0x23a   : > { %v1160_v21 = vpop.eup %1159 }
 0x23b   : > { %v870_v22 = vmul.f32 %v1160_v21, %v854_v2  ;;  %v871_v9 = vmul.f32 %v1160_v21, %v855_v3 }
 0x23d   : > { %v872_v23 = vadd.f32 %v870_v22, %v1252_v7  ;;  %v873_v24 = vadd.f32 %v871_v9, %v1254_v8 }
 0x23f   : > { %874 = vst.msk [vmem:[%s271_s16] sm:$0xff] %vm351_vm2, %v872_v23  ;;  %875 = vst.msk [vmem:[%s271_s16 + $0x8] sm:$0xff] %vm351_vm2, %v873_v24 }
 0x240 PF: > { %s16_s21 = sadd.s32 1, %s1167_s21  }
 0x241   : > { %p13_p4 = scmp.ge.s32.totalorder %s16_s21, 4  }
 0x243   :  { %15 = sbr.rel (!%p13_p4) target bundleno = 1 (0x1), region = 81 }

// kernel: decoder_forward.15
= control target key start
LH: loop header
LB: loop body
LE: loop exit
PB: predicated region body
PF: predicated region fallthrough
CT: control target
= control target key end

     0   :  { %13 = vsyncpa [#allocation4], 0  ;;  %s1174_s0 = inlined_call_operand.vmem [shape: f32[2,16,64], index: 0, kind: input, shape index: {}]   ;;  %s1175_s1 = inlined_call_operand.vmem [shape: f32[2,2,16,32], index: 1, kind: input, shape index: {}]   ;;  %s1176_s2 = inlined_call_operand.vmem [shape: bf16[64,64], index: 2, kind: input, shape index: {}]   ;;  %s1177_s3 = inlined_call_operand.vmem [shape: bf16[32,64], index: 3, kind: input, shape index: {}]   ;;  %s1178_s4 = inlined_call_operand.vmem [shape: bf16[32,64], index: 4, kind: input, shape index: {}]   ;;  %s1179_s5 = inlined_call_operand.vmem [shape: f32[1,64], index: 5, kind: input, shape index: {}]   ;;  %s1180_s6 = inlined_call_operand.vmem [shape: bf16[16,64], index: 6, kind: input, shape index: {}]   ;;  %s1181_s7 = inlined_call_operand.vmem [shape: f32[16,1], index: 7, kind: input, shape index: {}]   ;;  %s1182_s8 = inlined_call_operand.hbm [shape: f32[2,16,16], index: 8, kind: output, shape index: {}]  }
   0x1   :  { %15 = vsyncpa [#allocation4 + $0x1], 0  ;;  %s1012_s27 = smov 0   ;;  %s1014_s28 = smov 0  }
   0x2   :  { %s1016_s29 = smov 0   ;;  %s1018_s30 = smov 0  }
   0x3 LB: > { %s1033_s9 = sadd.s32 4294967295, %s959_s30   ;;  %s761_s10 = sadd.s32 4294967294, %s959_s30   ;;  %s959_s30 = sphi %s1018_s30, %s1188_s30   ;;  %s955_s29 = sphi %s1016_s29, %s1187_s29   ;;  %s951_s28 = sphi %s1014_s28, %s1186_s28   ;;  %s947_s27 = sphi %s1012_s27, %s1185_s27  }
   0x4   : > { %s1037_s11 = sadd.s32 1, %s959_s30   ;;  %s54_s12 = sadd.s32 1, %s955_s29 }
   0x5   : > { %s51_s13 = ssub.s32 %s959_s30, %s1037_s11  ;;  %p61_p0 = scmp.ne.s32.totalorder %s955_s29, %s951_s28 }
   0x6   : > { %p52_p1 = scmp.eq.s32.totalorder %s51_s13, 0  ;;  %p62_p2 = scmp.eq.s32.totalorder %s959_s30, 0 }
   0x7   : > { %p217_p3 = scmp.eq.s32.totalorder %s1033_s9, 1  ;;  %p222_p4 = scmp.ne.s32.totalorder %s951_s28, %s947_s27 }
   0x8   : > { %s1049_s14 = scalar_select %p52_p1, %s955_s29, %s54_s12  }
   0x9   : > { %p63_p5 = por %p62_p2, %p61_p0  ;;  %p1051_p6 = por %p217_p3, %p61_p0 }
   0xa   : > { %p223_p7 = scmp.eq.s32.totalorder %s761_s10, 1  ;;  %p763_p9 = scmp.ge.s32.totalorder %s959_s30, 2 }
   0xc   : > { %p1055_p8 = por %p223_p7, %p222_p4  ;;  %257 = sbr.rel (%p763_p9) target bundleno = 26 (0x1a), region = 40 }
  0x13   : > { %268 = sbr.rel (!%p63_p5) target bundleno = 26 (0x1a), region = 48  ;;  %s270_s17 = sand.u32 (%p63_p5), 1, %s955_s29  }
  0x14   : > { %s793_s18 = sshll.u32 (%p63_p5), %s959_s30, 4  ;;  %s764_s19 = sshll.u32 (%p63_p5), %s270_s17, 5 }
  0x15   : > { %s275_s22 = scalar_lea.vmem (%p63_p5), %s1175_s1, %s793_s18  ;;  %s272_s23 = scalar_lea.vmem (%p63_p5), [#allocation2], %s764_s19 }
  0x16   : > { %v309_v0 = vld [vmem:[%s275_s22] sm:$0xff] (%p63_p5)  ;;  %v311_v1 = vld [vmem:[%s275_s22 + $0x8] sm:$0xff] (%p63_p5) }
  0x17   : > { %v313_v2 = vld [vmem:[%s275_s22 + $0x20] sm:$0xff] (%p63_p5)  ;;  %310 = vst [vmem:[%s272_s23] sm:$0xff] (%p63_p5), %v309_v0  ;;  %312 = vst [vmem:[%s272_s23 + $0x8] sm:$0xff] (%p63_p5), %v311_v1  ;;  %v315_v3 = vld [vmem:[%s275_s22 + $0x28] sm:$0xff] (%p63_p5) }
  0x18   : > { %314 = vst [vmem:[%s272_s23 + $0x10] sm:$0xff] (%p63_p5), %v313_v2  ;;  %316 = vst [vmem:[%s272_s23 + $0x18] sm:$0xff] (%p63_p5), %v315_v3 }
  0x1a PF: > { %p767_p10 = scmp.ge.s32.totalorder %s959_s30, 1  ;;  %p321_p11 = scmp.lt.s32.totalorder %s959_s30, 3 }
  0x1c   : > { %p322_p12 = pnand %p767_p10, %p321_p11 }
  0x1d   : > { %v888_v4 = vld [vmem:[%s1177_s3] sm:$0xff] (!%p322_p12)   ;;  %v961_v5 = vmov (!%p322_p12), 0.0   ;;  %v890_v7 = vld [vmem:[%s1177_s3 + $0x8] sm:$0xff] (!%p322_p12)   ;;  %vm962_vm0 = vmmov (!%p322_p12), 0   ;;  %s1080_s17 = sand.u32 (!%p322_p12), 1, %s951_s28   ;;  %p366_p13 = scmp.lt.s32.totalorder (!%p322_p12), %s1033_s9, 1 }
  0x1e   : > { %325 = sbr.rel (%p322_p12) target bundleno = 511 (0x1ff), region = 86  ;;  %809 = vmatprep.subr.bf16.mxu0 (!%p322_p12), %v961_v5  ;;  %817 = vmatprep.subr.bf16.mxu1 (!%p322_p12), %v961_v5  ;;  %v889_v6 = vld [vmem:[%s1176_s2] sm:$0xff] (!%p322_p12)   ;;  %v891_v8 = vld [vmem:[%s1176_s2 + $0x8] sm:$0xff] (!%p322_p12)   ;;  %s768_s20 = sshll.u32 (!%p322_p12), %s1080_s17, 5  ;;  %vm405_vm1 = vcmask (!%p322_p12), 261120   ;;  %v892_v13 = vld [vmem:[%s1176_s2 + $0x10] sm:$0xff] (!%p322_p12)  }
  0x1f   : > { %810 = vmatpush3.bf16.msra.mxu0 (!%p322_p12), %v888_v4  ;;  %813 = vmatprep.mubr.msk.bf16.mxu0 (!%p322_p12), %vm962_vm0, %v961_v5  ;;  %s330_s21 = scalar_lea.vmem (!%p322_p12), [#allocation2], %s768_s20  ;;  %v893_v12 = vld [vmem:[%s1178_s4] sm:$0xff] (!%p322_p12)   ;;  %v895_v14 = vld [vmem:[%s1178_s4 + $0x8] sm:$0xff] (!%p322_p12)   ;;  %v894_v17 = vld [vmem:[%s1176_s2 + $0x18] sm:$0xff] (!%p322_p12)   ;;  %vm474_vm2 = vcmask (!%p322_p12), 523264   ;;  %v963_v23 = vmov (!%p322_p12), 0  }
  0x20   : > { %818 = vmatpush3.bf16.msra.mxu1 (!%p322_p12), %v889_v6  ;;  %811 = vmatprep.subr.bf16.mxu0 (!%p322_p12), %v961_v5  ;;  %v374_v9 = vld [vmem:[%s330_s21] sm:$0xff] (!%p322_p12)  ;;  %v375_v10 = vld [vmem:[%s330_s21 + $0x8] sm:$0xff] (!%p322_p12)  ;;  %v772_v15 = vld [vmem:[%s330_s21 + $0x10] sm:$0xff] (!%p322_p12)  ;;  %s769_s19 = sshll.u32 (!%p322_p12), %s1080_s17, 4  ;;  %s795_s23 = sshll.u32 (!%p322_p12), %s1033_s9, 8  ;;  %vm664_vm5 = vcmask (!%p322_p12), 130048  }
  0x21   : > { %819 = vmatprep.subr.bf16.mxu1 (!%p322_p12), %v961_v5  ;;  %825 = vmatprep.mubr.msk.bf16.mxu1 (!%p322_p12), %vm962_vm0, %v961_v5  ;;  %v388_v11 = vpack.c.bf16 (!%p322_p12), %v375_v10, %v374_v9  ;;  %v773_v16 = vld [vmem:[%s330_s21 + $0x18] sm:$0xff] (!%p322_p12)  ;;  %v600_v22 = vld [vmem:[%s1181_s7] sm:$0xff] (!%p322_p12)  ;;  %v601_v24 = vld [vmem:[%s1181_s7 + $0x8] sm:$0xff] (!%p322_p12)  ;;  %s1130_s25 = scalar_lea.hbm (!%p322_p12), %s1182_s8, %s795_s23  ;;  %s964_s10 = smov (!%p322_p12), [#allocation3]  }
  0x22   : > { %v519_v20 = vpack.c.bf16 (!%p322_p12), %v773_v16, %v772_v15  ;;  %887 = vset.pattern.permute.xlu0 (!%p322_p12), %v963_v23  ;;  %v785_v35 = vld [vmem:[%s1179_s5] ss:$0 sm:$0xff] (!%p322_p12)  ;;  %s901_s12 = sshll.u32 (!%p322_p12), %s964_s10, 4  ;;  %s902_s12 = int_to_ptr.vmem [resolvable:$false] %s901_s12 }
  0x23   : > { %812 = vmatpush3.bf16.msra.mxu0 (!%p322_p12), %v890_v7  ;;  %604 = vperm.xlu0 (!%p322_p12), %887, %v600_v22   ;;  %v896_v50 = vld [vmem:[%s1180_s6] sm:$0xff] (!%p322_p12)  }
  0x24   : > { %820 = vmatpush3.bf16.msra.mxu1 (!%p322_p12), %v891_v8  ;;  %829 = vmatprep.subr.bf16.mxu0 (!%p322_p12), %v961_v5 }
  0x25   : > { %s367_s26 = scalar_select %p366_p13, %s1033_s9, 1  ;;  %821 = vmatprep.subr.bf16.mxu1 %v961_v5 }
  0x26   : > { %814 = vmatmul.mubr.msk.bf16.vlgmr.msra.gmra.mrb[0].mxu0 %vm405_vm1, %v388_v11  ;;  %s668_s9 = scalar_lea.sflag [#allocation4], %s1080_s17 }
  0x27   : > { %s794_s13 = sshll.u32 %s367_s26, 4  ;;  %830 = vmatpush3.bf16.msra.mxu0 %v893_v12  ;;  %833 = vmatprep.mubr.msk.bf16.mxu0 %vm962_vm0, %v961_v5 }
  0x28   : > { %s370_s20 = scalar_lea.vmem %s1174_s0, %s794_s13  ;;  %822 = vmatpush3.bf16.msra.mxu1 %v892_v13  ;;  %831 = vmatprep.subr.bf16.mxu0 %v961_v5  ;;  %s903_s13 = scalar_lea.vmem %s902_s12, 512 }
  0x29   : > { %v372_v18 = vld [vmem:[%s370_s20] sm:$0xff]  ;;  %v373_v19 = vld [vmem:[%s370_s20 + $0x8] sm:$0xff]  ;;  %823 = vmatprep.subr.bf16.mxu1 %v961_v5  ;;  %609 = vperm.xlu0 %887, %v601_v24   ;;  %s365_s20 = scalar_lea.vmem [#allocation3], %s769_s19 }
  0x2a   : > { %v379_v21 = vpack.c.bf16 %v373_v19, %v372_v18  ;;  %s681_s22 = sshll.u32 %s365_s20, 4  ;;  %s1125_s22 = int_to_ptr.vmem [resolvable:$true] %s681_s22 }
  0x2b   : > { %832 = vmatpush3.bf16.msra.mxu0 %v895_v14  ;;  %s897_s26 = scalar_lea.vmem %s1125_s22, 256  ;;  %p904_p3 = scmp.lt.s32.totalorder %s1125_s22, %s902_s12 }
  0x2c   : > { %824 = vmatpush3.bf16.msra.mxu1 %v894_v17  ;;  %837 = vmatprep.subr.bf16.mxu0 %v961_v5  ;;  %p898_p0 = scmp.ne.s32.totalorder %s1125_s22, %s897_s26  ;;  %p905_p4 = scmp.lt.s32.totalorder %s903_s13, %s897_s26 }
  0x2e   : > { %834 = vmatmul.mubr.msk.bf16.vlgmr.msra.gmra.mrb[4].mxu0 %vm405_vm1, %v519_v20  ;;  %p899_p1 = pnand %p898_p0, %p1051_p6  ;;  %p906_p5 = por %p905_p4, %p904_p3 }
  0x2f   : > { %826 = vmatmul.mubr.msk.bf16.vlgmr.msra.gmra.mrb[0].mxu1 %vm474_vm2, %v379_v21  ;;  %839 = vmatprep.mubr.msk.bf16.mxu0 %vm962_vm0, %v961_v5 }
  0x30   : > { %p900_p2 = pneg %p899_p1 }
  0x32   : > { %p907_p7 = pnand %p906_p5, %p900_p2 }
  0xa2   : > { %v605_v51 = vpop.permute.xlu0 %604 }
  0xa8   : > { %v610_v55 = vpop.permute.xlu0 %609 }
  0xf9   : > { %v443_v25 = vpop.f32.mrb[0].mxu0 }
  0xfa   : > { %v815_v26 = vpop.f32.mrb[1].mxu0 }
  0xfb   : > { %v446_v27 = vpop.f32.mrb[2].mxu0 }
  0xfc   : > { %v816_v28 = vpop.f32.mrb[3].mxu0 }
 0x101   : > { %v573_v29 = vpop.f32.mrb[4].mxu0 }
 0x102   : > { %v512_v30 = vpop.f32.mrb[0].mxu1  ;;  %v835_v31 = vpop.f32.mrb[5].mxu0 }
 0x103   : > { %v513_v32 = vadd.f32 %v512_v30, %v443_v25  ;;  %v827_v33 = vpop.f32.mrb[1].mxu1  ;;  %v576_v34 = vpop.f32.mrb[6].mxu0 }
 0x104   : > { %v515_v36 = vpop.f32.mrb[2].mxu1  ;;  %v836_v37 = vpop.f32.mrb[7].mxu0 }
 0x105   : > { %v580_v38 = vadd.f32 %v573_v29, %v513_v32  ;;  %v516_v39 = vadd.f32 %v515_v36, %v446_v27  ;;  %v828_v40 = vpop.f32.mrb[3].mxu1 }
 0x107   : > { %v589_v41 = vadd.f32 %v785_v35, %v580_v38  ;;  %v581_v42 = vadd.f32 %v576_v34, %v516_v39 }
 0x109   : > { %v593_v43 = vmul.f32 0.2, %v589_v41  ;;  %v590_v44 = vadd.f32 %v785_v35, %v581_v42  ;;  %vm591_vm3 = vcmp.ge.f32.partialorder %v589_v41, 0.0 }
 0x10b   : > { %vm592_vm4 = vcmp.ge.f32.partialorder %v590_v44, 0.0  ;;  %v594_v45 = vmul.f32 0.2, %v590_v44  ;;  %v595_v46 = vsel %vm591_vm3, %v589_v41, %v593_v43 }
 0x10d   : > { %v596_v47 = vsel %vm592_vm4, %v590_v44, %v594_v45 }
 0x10e   : > { %v599_v48 = vpack.c.bf16 %v596_v47, %v595_v46 }
 0x110   : > { %v621_v49 = vsel %vm474_vm2, %v599_v48, 0 }
 0x111   : > { %838 = vmatpush3.bf16.xpose.msra.mxu0 %v621_v49 }
 0x118   : > { %840 = vmatmul.mubr.msk.bf16.vlgmr.msra.gmra.mrb[8].mxu0 %vm474_vm2, %v896_v50 }
 0x1eb   : > { %v657_v52 = vpop.f32.mrb[8].mxu0 }
 0x1ec   : > { %v658_v53 = vadd.f32 %v657_v52, %v605_v51  ;;  %v841_v54 = vpop.f32.mrb[9].mxu0 }
 0x1ed   : > { %v660_v56 = vpop.f32.mrb[10].mxu0 }
 0x1ee   : > { %665 = vst.msk [vmem:[%s365_s20] sm:$0xff] %vm664_vm5, %v658_v53  ;;  %v661_v57 = vadd.f32 %v660_v56, %v610_v55  ;;  %v842_v58 = vpop.f32.mrb[11].mxu0 }
 0x1f0   : > { %666 = vst.msk [vmem:[%s365_s20 + $0x8] sm:$0xff] %vm664_vm5, %v661_v57 }
 0x1f1   : > { %910 = shalt.err (!%p907_p7)
}
 0x1f2   : > { %s911_s18 = scalar_lea.hbm %s1130_s25, 256  ;;  %s915_s23 = scalar_lea.hbm %s1182_s8, 512 }
 0x1f3   : > { %p912_p10 = scmp.ne.s32.totalorder %s1130_s25, %s911_s18  ;;  %p916_p13 = scmp.lt.u32.totalorder %s1130_s25, %s1182_s8 }
 0x1f4   : > { %p917_p0 = scmp.lt.u32.totalorder %s915_s23, %s911_s18  ;;  %p919_p2 = scmp.lt.u32.totalorder %s911_s18, %s1130_s25 }
 0x1f5   : > { %p913_p11 = pnand %p912_p10, %p1051_p6 }
 0x1f6   : > { %p918_p1 = por %p917_p0, %p916_p13 }
 0x1f7   : > { %p914_p12 = pneg %p913_p11 }
 0x1f8   : > { %p920_p3 = por %p919_p2, %p918_p1 }
 0x1fa   : > { %p921_p4 = pnand %p920_p3, %p914_p12 }
 0x1fc   : > { %924 = shalt.err (!%p921_p4)
}
 0x1fd   : > { %s965_s26 = smov 128   ;;  %s966_s10 = smov 8  }
 0x1fe   : > { %843 = dma.vmem_to_hbm [thread:$0]  (%p1051_p6), %s1125_s22, 256, %s1130_s25, %s668_s9, %s965_s26, %s965_s26, %s966_s10  }
 0x1ff PF: > { %s696_s12 = sand.u32 1, %s947_s27   ;;  %p846_p5 = pnand %p763_p9, %p1055_p8 }
 0x200   : > { %s697_s13 = scalar_lea.sflag [#allocation4], %s696_s12 }
 0x201   : > { %942 = dma.done.wait (!%p846_p5), %s697_s13, 256  }
 0x202   : > { %944 = vsyncadd (!%p846_p5), %s697_s13, 4294967040  ;;  %p18_p7 = scmp.ge.s32.totalorder %s1037_s11, 4   ;;  %s1185_s27 = smov %s951_s28 }
 0x203   : > { %s1186_s28 = smov %s955_s29  ;;  %s1187_s29 = smov %s1049_s14 }
 0x204   : > { %s1188_s30 = smov %s1037_s11  ;;  %20 = sbr.rel (!%p18_p7) target bundleno = 3 (0x3), region = 134 }
 0x20b   :  { %702 = vsyncpa [#allocation4], 1 }
 0x20c   :  { %704 = vsyncpa [#allocation4 + $0x1], 1 }

</bundles_post_ra>
